<compile_context>
chip_gen: v6e
topology: v6e:2x2x1
jax: 0.10.0
libtpu: 0.0.40
codegen_flags: <defaults>
</compile_context>

<pallas_src>
import functools
import math

import jax
import jax.numpy as jnp
from jax.experimental import pallas as pl
from jax.experimental.pallas import tpu as pltpu


# ----------------------------------------------------------------------------
# Fused per-layer kernel.
#   dq_ref, dk_ref : (1, chunk, C) bf16  — row-chunk of (feat_c - feat_q_n)
#                    for the q and k branches.
#   w1,w2,w3       : bf16 weights; b1,b2,b3 : f32 row-vector biases.
#   o_ref          : (1, 1, 1) f32       — per-batch sum of row cross-entropies.
#   q_scr, k_scr   : (S, d_out) f32 VMEM — resident MLP outputs across chunks.
# ----------------------------------------------------------------------------
def ccpl_layer_kernel(dq_ref, dk_ref, w1_ref, b1_ref, w2_ref, b2_ref,
                      w3_ref, b3_ref, o_ref, q_scr, k_scr, *, chunk, inv_tau):
    c = pl.program_id(1)
    row0 = pl.multiple_of(c * chunk, chunk)

    # Linear -> ReLU -> Linear -> ReLU -> Linear (bf16 operands, f32 accum).
    def mlp(x_bf16):
        h = jnp.dot(x_bf16, w1_ref[...],
                    preferred_element_type=jnp.float32) + b1_ref[...]
        h = jnp.maximum(h, 0.0)
        h = jnp.dot(h.astype(jnp.bfloat16), w2_ref[...],
                    preferred_element_type=jnp.float32) + b2_ref[...]
        h = jnp.maximum(h, 0.0)
        return (jnp.dot(h.astype(jnp.bfloat16), w3_ref[...],
                        preferred_element_type=jnp.float32) + b3_ref[...])

    q_scr[pl.ds(row0, chunk), :] = mlp(dq_ref[0])     # (chunk, d_out)
    k_scr[pl.ds(row0, chunk), :] = mlp(dk_ref[0])

    # PatchNCE epilogue once the full (S, d_out) q/k slabs are resident.
    @pl.when(c == pl.num_programs(1) - 1)
    def _():
        q = q_scr[...] * inv_tau                      # fold 1/tau into q once
        k = k_scr[...]
        # Positive logit (already scaled by 1/tau through q).
        pos = jnp.sum(q * k, axis=1, keepdims=True)   # (S, 1)
        # Full similarity matrix; diag(logits) == pos, so the UNMASKED row
        # logsumexp equals the reference logsumexp over [pos, masked negs].
        logits = jax.lax.dot_general(q, k, (((1,), (1,)), ((), ())),
                                     preferred_element_type=jnp.float32)
        m = jnp.max(logits, axis=1, keepdims=True)    # (S, 1), always finite
        lse = m + jnp.log(jnp.sum(jnp.exp(logits - m), axis=1, keepdims=True))
        o_ref[...] = jnp.full((1, 1, 1), jnp.sum(lse - pos), jnp.float32)


def _pick_n_chunks(s):
    """Row-chunking of the S dimension: aim for ~128-row chunks but at least
    2 chunks per batch element so the per-chunk input DMA pipelines with the
    MLP matmuls.  Chunks must be a multiple of 8 (sublane) or cover all of S."""
    for n in (max(2, s // 128), 4, 2):
        if n >= 1 and s % n == 0 and (s // n) % 8 == 0:
            return n
    return 1


@functools.partial(jax.jit, static_argnames=("tau",))
def ccpl_layer_loss(feat_q, feat_k, c_ids, n_ids, params, tau):
    """Mean PatchNCE loss for one pyramid layer."""
    B, C, H, W = feat_q.shape
    S = int(c_ids.shape[0])
    w1, b1, w2, b2, w3, b3 = params
    d_out = w3.shape[1]

    # Gather in the native (B, C, HW) layout (no full-feature-map transpose),
    # subtract in f32, transpose only the small result, cast to bf16.
    def diff_slab(feat):
        r = feat.reshape(B, C, H * W)
        d = jnp.take(r, c_ids, axis=2) - jnp.take(r, n_ids, axis=2)  # (B,C,S) f32
        return jnp.transpose(d.astype(jnp.bfloat16), (0, 2, 1))      # (B,S,C) bf16

    d_q = diff_slab(feat_q)
    d_k = diff_slab(feat_k)   # same sample_ids as q (reference behaviour)

    # One-time cast of the weights; biases stay f32 (added after f32 accum).
    w1b = w1.astype(jnp.bfloat16)
    w2b = w2.astype(jnp.bfloat16)
    w3b = w3.astype(jnp.bfloat16)

    n_chunks = _pick_n_chunks(S)
    chunk = S // n_chunks

    kern = functools.partial(ccpl_layer_kernel, chunk=chunk,
                             inv_tau=1.0 / float(tau))
    const = lambda shape: pl.BlockSpec(shape, lambda b, c: (0,) * len(shape))
    partials = pl.pallas_call(
        kern,
        out_shape=jax.ShapeDtypeStruct((B, 1, 1), jnp.float32),
        grid=(B, n_chunks),
        in_specs=[
            pl.BlockSpec((1, chunk, C), lambda b, c: (b, c, 0)),   # d_q chunk
            pl.BlockSpec((1, chunk, C), lambda b, c: (b, c, 0)),   # d_k chunk
            const((C, C)), const((1, C)),          # w1, b1 (VMEM-resident)
            const((C, C)), const((1, C)),          # w2, b2
            const((C, d_out)), const((1, d_out)),  # w3, b3
        ],
        out_specs=pl.BlockSpec((1, 1, 1), lambda b, c: (b, 0, 0)),
        scratch_shapes=[pltpu.VMEM((S, d_out), jnp.float32),   # q MLP output
                        pltpu.VMEM((S, d_out), jnp.float32)],  # k MLP output
        compiler_params=pltpu.CompilerParams(
            dimension_semantics=("parallel", "arbitrary")),
    )(d_q, d_k, w1b, b1, w2b, b2, w3b, b3)

    # CrossEntropyLoss default reduction: mean over the B*S rows.
    return jnp.sum(partials) / float(B * S)


# ----------------------------------------------------------------------------
# Glue: neighbor sampling (index math) and parameter init.
# ----------------------------------------------------------------------------
def neighbor_sample_ids(key, h, w, num_s):
    n_interior = (h - 2) * (w - 2)
    num_s = min(num_s, n_interior)
    s_ids = jax.random.permutation(key, n_interior)[:num_s]
    ch_ids = s_ids // (w - 2) + 1
    cw_ids = s_ids % (w - 2) + 1
    c = ch_ids * w + cw_ids
    c_ids = jnp.tile(c, 8)                                # .repeat(8) in torch
    dic = jnp.array([-(w + 1), -w, -(w - 1), -1, 1, w - 1, w, w + 1],
                    dtype=c_ids.dtype)
    delta = jnp.repeat(dic, num_s)                        # dic[i // num_s]
    n_ids = c_ids + delta
    return c_ids, n_ids


def make_mlp_params(key, layer):
    """Weights for mlp[5*layer : 5*layer+5]: Linear(d,d), Linear(d,d), Linear(d,d//4)."""
    d = 64 * (2 ** layer)
    d_out = d // 4
    ks = jax.random.split(key, 6)
    bound = 1.0 / math.sqrt(d)
    u = lambda k, shape: jax.random.uniform(k, shape, jnp.float32, -bound, bound)
    return (u(ks[0], (d, d)), u(ks[1], (1, d)),
            u(ks[2], (d, d)), u(ks[3], (1, d)),
            u(ks[4], (d, d_out)), u(ks[5], (1, d_out)))


def ccpl_forward(feats_q, feats_k, num_s, start_layer, end_layer, mlp_params,
                 sample_key, tau=0.01):
    loss_ccp = jnp.float32(0.0)
    for i in range(start_layer, end_layer):
        fq, fk = feats_q[i], feats_k[i]
        _, _, H, W = fq.shape
        layer_key = jax.random.fold_in(sample_key, i)
        c_ids, n_ids = neighbor_sample_ids(layer_key, H, W, num_s)
        loss_ccp = loss_ccp + ccpl_layer_loss(fq, fk, c_ids, n_ids,
                                              mlp_params[i], tau)
    return loss_ccp


if __name__ == "__main__":
    key = jax.random.PRNGKey(0)
    kq0, kk0, kq1, kk1, kw, ks = jax.random.split(key, 6)

    # Small feature pyramid: layer 0 has 64 channels, layer 1 has 128 channels
    # (channel counts are dictated by the fixed MLP in the reference module).
    feats_q = [jax.random.normal(kq0, (2, 64, 16, 16), jnp.float32),
               jax.random.normal(kq1, (2, 128, 8, 8), jnp.float32)]
    feats_k = [jax.random.normal(kk0, (2, 64, 16, 16), jnp.float32),
               jax.random.normal(kk1, (2, 128, 8, 8), jnp.float32)]

    mlp_params = {i: make_mlp_params(jax.random.fold_in(kw, i), i)
                  for i in range(2)}

    # num_s=16 -> S = 8*num_s = 128 rows per branch; chunked into 64-row tiles.
    loss = ccpl_forward(feats_q, feats_k, num_s=16,
                        start_layer=0, end_layer=2,
                        mlp_params=mlp_params, sample_key=ks, tau=0.01)
    jax.block_until_ready(loss)
    assert jnp.isfinite(loss)
    print("KERNEL_OK")
</pallas_src>

<mosaic_0001>
module attributes {stable_mosaic.version = 11 : i64} {
  func.func @ccpl_layer_kernel(%arg0: i32, %arg1: i32, %arg2: memref<1x64x64xbf16, #tpu.memory_space<vmem>>, %arg3: memref<1x64x64xbf16, #tpu.memory_space<vmem>>, %arg4: memref<64x64xbf16, #tpu.memory_space<vmem>>, %arg5: memref<1x64xf32, #tpu.memory_space<vmem>>, %arg6: memref<64x64xbf16, #tpu.memory_space<vmem>>, %arg7: memref<1x64xf32, #tpu.memory_space<vmem>>, %arg8: memref<64x16xbf16, #tpu.memory_space<vmem>>, %arg9: memref<1x16xf32, #tpu.memory_space<vmem>>, %arg10: memref<1x1x1xf32, #tpu.memory_space<vmem>>, %arg11: memref<128x16xf32, #tpu.memory_space<vmem>>, %arg12: memref<128x16xf32, #tpu.memory_space<vmem>>) attributes {dimension_semantics = [#tpu.dimension_semantics<parallel>, #tpu.dimension_semantics<arbitrary>], iteration_bounds = array<i64: 2, 2>, scalar_prefetch = 0 : i64, scratch_operands = 2 : i64, tpu.core_type = #tpu.core_type<tc>, window_params = [{transform_indices = @transform_0, window_bounds = array<i64: 1, 64, 64>}, {transform_indices = @transform_1, window_bounds = array<i64: 1, 64, 64>}, {pipeline_mode = #tpu.pipeline_mode<synchronous>, transform_indices = @transform_2, window_bounds = array<i64: 64, 64>}, {pipeline_mode = #tpu.pipeline_mode<synchronous>, transform_indices = @transform_3, window_bounds = array<i64: 1, 64>}, {pipeline_mode = #tpu.pipeline_mode<synchronous>, transform_indices = @transform_4, window_bounds = array<i64: 64, 64>}, {pipeline_mode = #tpu.pipeline_mode<synchronous>, transform_indices = @transform_5, window_bounds = array<i64: 1, 64>}, {pipeline_mode = #tpu.pipeline_mode<synchronous>, transform_indices = @transform_6, window_bounds = array<i64: 64, 16>}, {pipeline_mode = #tpu.pipeline_mode<synchronous>, transform_indices = @transform_7, window_bounds = array<i64: 1, 16>}, {transform_indices = @transform_8, window_bounds = array<i64: 1, 1, 1>}]} {
    %c64_i32 = arith.constant 64 : i32
    %0 = arith.muli %arg1, %c64_i32 : i32
    %1 = tpu.assume_multiple %0, 64 : i32
    %c0 = arith.constant 0 : index
    %c0_0 = arith.constant 0 : index
    %c0_1 = arith.constant 0 : index
    %2 = vector.load %arg2[%c0, %c0_0, %c0_1] : memref<1x64x64xbf16, #tpu.memory_space<vmem>>, vector<1x64x64xbf16>
    %3 = vector.shape_cast %2 : vector<1x64x64xbf16> to vector<64x64xbf16>
    %c0_2 = arith.constant 0 : index
    %c0_3 = arith.constant 0 : index
    %4 = vector.load %arg4[%c0_2, %c0_3] : memref<64x64xbf16, #tpu.memory_space<vmem>>, vector<64x64xbf16>
    %cst = arith.constant dense<0.000000e+00> : vector<64x64xf32>
    %5 = tpu.matmul %3, %4, %cst {dimension_numbers = #tpu.dot_dimension_numbers<[1], [0], [0], [1], [0, 0, 1, 1], [], []>} : vector<64x64xbf16>, vector<64x64xbf16>, vector<64x64xf32> -> vector<64x64xf32>
    %c0_4 = arith.constant 0 : index
    %c0_5 = arith.constant 0 : index
    %6 = vector.load %arg5[%c0_4, %c0_5] : memref<1x64xf32, #tpu.memory_space<vmem>>, vector<1x64xf32>
    %7 = vector.broadcast %6 : vector<1x64xf32> to vector<64x64xf32>
    %8 = arith.addf %5, %7 : vector<64x64xf32>
    %cst_6 = arith.constant 0.000000e+00 : f32
    %9 = vector.broadcast %cst_6 : f32 to vector<64x64xf32>
    %10 = arith.maximumf %8, %9 : vector<64x64xf32>
    %11 = arith.truncf %10 : vector<64x64xf32> to vector<64x64xbf16>
    %c0_7 = arith.constant 0 : index
    %c0_8 = arith.constant 0 : index
    %12 = vector.load %arg6[%c0_7, %c0_8] : memref<64x64xbf16, #tpu.memory_space<vmem>>, vector<64x64xbf16>
    %cst_9 = arith.constant dense<0.000000e+00> : vector<64x64xf32>
    %13 = tpu.matmul %11, %12, %cst_9 {dimension_numbers = #tpu.dot_dimension_numbers<[1], [0], [0], [1], [0, 0, 1, 1], [], []>} : vector<64x64xbf16>, vector<64x64xbf16>, vector<64x64xf32> -> vector<64x64xf32>
    %c0_10 = arith.constant 0 : index
    %c0_11 = arith.constant 0 : index
    %14 = vector.load %arg7[%c0_10, %c0_11] : memref<1x64xf32, #tpu.memory_space<vmem>>, vector<1x64xf32>
    %15 = vector.broadcast %14 : vector<1x64xf32> to vector<64x64xf32>
    %16 = arith.addf %13, %15 : vector<64x64xf32>
    %cst_12 = arith.constant 0.000000e+00 : f32
    %17 = vector.broadcast %cst_12 : f32 to vector<64x64xf32>
    %18 = arith.maximumf %16, %17 : vector<64x64xf32>
    %19 = arith.truncf %18 : vector<64x64xf32> to vector<64x64xbf16>
    %c0_13 = arith.constant 0 : index
    %c0_14 = arith.constant 0 : index
    %20 = vector.load %arg8[%c0_13, %c0_14] : memref<64x16xbf16, #tpu.memory_space<vmem>>, vector<64x16xbf16>
    %cst_15 = arith.constant dense<0.000000e+00> : vector<64x16xf32>
    %21 = tpu.matmul %19, %20, %cst_15 {dimension_numbers = #tpu.dot_dimension_numbers<[1], [0], [0], [1], [0, 0, 1, 1], [], []>} : vector<64x64xbf16>, vector<64x16xbf16>, vector<64x16xf32> -> vector<64x16xf32>
    %c0_16 = arith.constant 0 : index
    %c0_17 = arith.constant 0 : index
    %22 = vector.load %arg9[%c0_16, %c0_17] : memref<1x16xf32, #tpu.memory_space<vmem>>, vector<1x16xf32>
    %23 = vector.broadcast %22 : vector<1x16xf32> to vector<64x16xf32>
    %24 = arith.addf %21, %23 : vector<64x16xf32>
    %25 = arith.index_cast %1 : i32 to index
    %c0_18 = arith.constant 0 : index
    %26 = vector.load %arg11[%25, %c0_18] : memref<128x16xf32, #tpu.memory_space<vmem>>, vector<64x16xf32>
    tpu.vector_store %arg11[%25, %c0_18], %24 {strides = array<i32>} : memref<128x16xf32, #tpu.memory_space<vmem>>, vector<64x16xf32>,
    %c0_19 = arith.constant 0 : index
    %c0_20 = arith.constant 0 : index
    %c0_21 = arith.constant 0 : index
    %27 = vector.load %arg3[%c0_19, %c0_20, %c0_21] : memref<1x64x64xbf16, #tpu.memory_space<vmem>>, vector<1x64x64xbf16>
    %28 = vector.shape_cast %27 : vector<1x64x64xbf16> to vector<64x64xbf16>
    %c0_22 = arith.constant 0 : index
    %c0_23 = arith.constant 0 : index
    %29 = vector.load %arg4[%c0_22, %c0_23] : memref<64x64xbf16, #tpu.memory_space<vmem>>, vector<64x64xbf16>
    %cst_24 = arith.constant dense<0.000000e+00> : vector<64x64xf32>
    %30 = tpu.matmul %28, %29, %cst_24 {dimension_numbers = #tpu.dot_dimension_numbers<[1], [0], [0], [1], [0, 0, 1, 1], [], []>} : vector<64x64xbf16>, vector<64x64xbf16>, vector<64x64xf32> -> vector<64x64xf32>
    %c0_25 = arith.constant 0 : index
    %c0_26 = arith.constant 0 : index
    %31 = vector.load %arg5[%c0_25, %c0_26] : memref<1x64xf32, #tpu.memory_space<vmem>>, vector<1x64xf32>
    %32 = vector.broadcast %31 : vector<1x64xf32> to vector<64x64xf32>
    %33 = arith.addf %30, %32 : vector<64x64xf32>
    %cst_27 = arith.constant 0.000000e+00 : f32
    %34 = vector.broadcast %cst_27 : f32 to vector<64x64xf32>
    %35 = arith.maximumf %33, %34 : vector<64x64xf32>
    %36 = arith.truncf %35 : vector<64x64xf32> to vector<64x64xbf16>
    %c0_28 = arith.constant 0 : index
    %c0_29 = arith.constant 0 : index
    %37 = vector.load %arg6[%c0_28, %c0_29] : memref<64x64xbf16, #tpu.memory_space<vmem>>, vector<64x64xbf16>
    %cst_30 = arith.constant dense<0.000000e+00> : vector<64x64xf32>
    %38 = tpu.matmul %36, %37, %cst_30 {dimension_numbers = #tpu.dot_dimension_numbers<[1], [0], [0], [1], [0, 0, 1, 1], [], []>} : vector<64x64xbf16>, vector<64x64xbf16>, vector<64x64xf32> -> vector<64x64xf32>
    %c0_31 = arith.constant 0 : index
    %c0_32 = arith.constant 0 : index
    %39 = vector.load %arg7[%c0_31, %c0_32] : memref<1x64xf32, #tpu.memory_space<vmem>>, vector<1x64xf32>
    %40 = vector.broadcast %39 : vector<1x64xf32> to vector<64x64xf32>
    %41 = arith.addf %38, %40 : vector<64x64xf32>
    %cst_33 = arith.constant 0.000000e+00 : f32
    %42 = vector.broadcast %cst_33 : f32 to vector<64x64xf32>
    %43 = arith.maximumf %41, %42 : vector<64x64xf32>
    %44 = arith.truncf %43 : vector<64x64xf32> to vector<64x64xbf16>
    %c0_34 = arith.constant 0 : index
    %c0_35 = arith.constant 0 : index
    %45 = vector.load %arg8[%c0_34, %c0_35] : memref<64x16xbf16, #tpu.memory_space<vmem>>, vector<64x16xbf16>
    %cst_36 = arith.constant dense<0.000000e+00> : vector<64x16xf32>
    %46 = tpu.matmul %44, %45, %cst_36 {dimension_numbers = #tpu.dot_dimension_numbers<[1], [0], [0], [1], [0, 0, 1, 1], [], []>} : vector<64x64xbf16>, vector<64x16xbf16>, vector<64x16xf32> -> vector<64x16xf32>
    %c0_37 = arith.constant 0 : index
    %c0_38 = arith.constant 0 : index
    %47 = vector.load %arg9[%c0_37, %c0_38] : memref<1x16xf32, #tpu.memory_space<vmem>>, vector<1x16xf32>
    %48 = vector.broadcast %47 : vector<1x16xf32> to vector<64x16xf32>
    %49 = arith.addf %46, %48 : vector<64x16xf32>
    %50 = arith.index_cast %1 : i32 to index
    %c0_39 = arith.constant 0 : index
    %51 = vector.load %arg12[%50, %c0_39] : memref<128x16xf32, #tpu.memory_space<vmem>>, vector<64x16xf32>
    tpu.vector_store %arg12[%50, %c0_39], %49 {strides = array<i32>} : memref<128x16xf32, #tpu.memory_space<vmem>>, vector<64x16xf32>,
    %c1_i32 = arith.constant 1 : i32
    %52 = arith.cmpi eq, %arg1, %c1_i32 : i32
    %53 = arith.extui %52 : i1 to i32
    %c0_i32 = arith.constant 0 : i32
    %54 = arith.cmpi ne, %53, %c0_i32 : i32
    scf.if %54 {
      %c0_40 = arith.constant 0 : index
      %c0_41 = arith.constant 0 : index
      %55 = vector.load %arg11[%c0_40, %c0_41] : memref<128x16xf32, #tpu.memory_space<vmem>>, vector<128x16xf32>
      %cst_42 = arith.constant 1.000000e+02 : f32
      %56 = vector.broadcast %cst_42 : f32 to vector<128x16xf32>
      %57 = arith.mulf %55, %56 : vector<128x16xf32>
      %c0_43 = arith.constant 0 : index
      %c0_44 = arith.constant 0 : index
      %58 = vector.load %arg12[%c0_43, %c0_44] : memref<128x16xf32, #tpu.memory_space<vmem>>, vector<128x16xf32>
      %59 = arith.mulf %57, %58 : vector<128x16xf32>
      %cst_45 = arith.constant dense<0.000000e+00> : vector<128xf32>
      %60 = vector.multi_reduction <add>, %59, %cst_45 [1] : vector<128x16xf32> to vector<128xf32>
      %61 = vector.shape_cast %60 : vector<128xf32> to vector<128x1xf32>
      %cst_46 = arith.constant dense<0.000000e+00> : vector<128x128xf32>
      %62 = tpu.matmul %57, %58, %cst_46 {dimension_numbers = #tpu.dot_dimension_numbers<[1], [1], [0], [0], [0, 0, 1, 0], [], []>} : vector<128x16xf32>, vector<128x16xf32>, vector<128x128xf32> -> vector<128x128xf32>
      %cst_47 = arith.constant dense<0xFF800000> : vector<128xf32>
      %63 = vector.multi_reduction <maximumf>, %62, %cst_47 [1] : vector<128x128xf32> to vector<128xf32>
      %64 = vector.shape_cast %63 : vector<128xf32> to vector<128x1xf32>
      %65 = vector.broadcast %64 : vector<128x1xf32> to vector<128x128xf32>
      %66 = arith.subf %62, %65 : vector<128x128xf32>
      %67 = math.exp %66 : vector<128x128xf32>
      %cst_48 = arith.constant dense<0.000000e+00> : vector<128xf32>
      %68 = vector.multi_reduction <add>, %67, %cst_48 [1] : vector<128x128xf32> to vector<128xf32>
      %69 = vector.shape_cast %68 : vector<128xf32> to vector<128x1xf32>
      %70 = math.log %69 : vector<128x1xf32>
      %71 = arith.addf %64, %70 : vector<128x1xf32>
      %72 = arith.subf %71, %61 : vector<128x1xf32>
      %73 = vector.shape_cast %72 : vector<128x1xf32> to vector<1x128x1xf32>
      %cst_49 = arith.constant dense<0.000000e+00> : vector<1xf32>
      %74 = vector.multi_reduction <add>, %73, %cst_49 [1, 2] : vector<1x128x1xf32> to vector<1xf32>
      %75 = vector.shape_cast %74 : vector<1xf32> to vector<1x1x1xf32>
      %76 = vector.extract %75[0, 0, 0] : f32 from vector<1x1x1xf32>
      %77 = vector.broadcast %76 : f32 to vector<1x1x1xf32>
      %c0_50 = arith.constant 0 : index
      %c0_51 = arith.constant 0 : index
      %c0_52 = arith.constant 0 : index
      %78 = vector.load %arg10[%c0_50, %c0_51, %c0_52] : memref<1x1x1xf32, #tpu.memory_space<vmem>>, vector<1x1x1xf32>
      tpu.vector_store %arg10[%c0_50, %c0_51, %c0_52], %77 {strides = array<i32>} : memref<1x1x1xf32, #tpu.memory_space<vmem>>, vector<1x1x1xf32>,
    } else {
    }
    return
  }
  func.func @transform_0(%arg0: i32, %arg1: i32) -> (i32, i32, i32) {
    %c0_i32 = arith.constant 0 : i32
    %c0_i32_0 = arith.constant 0 : i32
    return %arg0, %arg1, %c0_i32 : i32, i32, i32
  }
  func.func @transform_1(%arg0: i32, %arg1: i32) -> (i32, i32, i32) {
    %c0_i32 = arith.constant 0 : i32
    %c0_i32_0 = arith.constant 0 : i32
    return %arg0, %arg1, %c0_i32 : i32, i32, i32
  }
  func.func @transform_2(%arg0: i32, %arg1: i32) -> (i32, i32) {
    %c0_i32 = arith.constant 0 : i32
    %c0_i32_0 = arith.constant 0 : i32
    %c0_i32_1 = arith.constant 0 : i32
    return %c0_i32, %c0_i32_0 : i32, i32
  }
  func.func @transform_3(%arg0: i32, %arg1: i32) -> (i32, i32) {
    %c0_i32 = arith.constant 0 : i32
    %c0_i32_0 = arith.constant 0 : i32
    %c0_i32_1 = arith.constant 0 : i32
    return %c0_i32, %c0_i32_0 : i32, i32
  }
  func.func @transform_4(%arg0: i32, %arg1: i32) -> (i32, i32) {
    %c0_i32 = arith.constant 0 : i32
    %c0_i32_0 = arith.constant 0 : i32
    %c0_i32_1 = arith.constant 0 : i32
    return %c0_i32, %c0_i32_0 : i32, i32
  }
  func.func @transform_5(%arg0: i32, %arg1: i32) -> (i32, i32) {
    %c0_i32 = arith.constant 0 : i32
    %c0_i32_0 = arith.constant 0 : i32
    %c0_i32_1 = arith.constant 0 : i32
    return %c0_i32, %c0_i32_0 : i32, i32
  }
  func.func @transform_6(%arg0: i32, %arg1: i32) -> (i32, i32) {
    %c0_i32 = arith.constant 0 : i32
    %c0_i32_0 = arith.constant 0 : i32
    %c0_i32_1 = arith.constant 0 : i32
    return %c0_i32, %c0_i32_0 : i32, i32
  }
  func.func @transform_7(%arg0: i32, %arg1: i32) -> (i32, i32) {
    %c0_i32 = arith.constant 0 : i32
    %c0_i32_0 = arith.constant 0 : i32
    %c0_i32_1 = arith.constant 0 : i32
    return %c0_i32, %c0_i32_0 : i32, i32
  }
  func.func @transform_8(%arg0: i32, %arg1: i32) -> (i32, i32, i32) {
    %c0_i32 = arith.constant 0 : i32
    %c0_i32_0 = arith.constant 0 : i32
    %c0_i32_1 = arith.constant 0 : i32
    return %arg0, %c0_i32, %c0_i32_0 : i32, i32, i32
  }
}

</mosaic_0001>

<bundles_post_ra>
// kernel: ccpl_layer_loss.1
= control target key start
LH: loop header
LB: loop body
LE: loop exit
PB: predicated region body
PF: predicated region fallthrough
CT: control target
= control target key end

     0   :  { %s2447_s27 = smov 0   ;;  %s2449_s28 = smov 0   ;;  %s3096_s0 = inlined_call_operand.vmem [shape: bf16[2,128,64], index: 0, kind: input, shape index: {}]   ;;  %s3097_s1 = inlined_call_operand.vmem [shape: bf16[2,128,64], index: 1, kind: input, shape index: {}]   ;;  %s3098_s2 = inlined_call_operand.vmem [shape: bf16[64,64], index: 2, kind: input, shape index: {}]   ;;  %s3099_s3 = inlined_call_operand.vmem [shape: f32[1,64], index: 3, kind: input, shape index: {}]   ;;  %s3100_s4 = inlined_call_operand.vmem [shape: bf16[64,64], index: 4, kind: input, shape index: {}]   ;;  %s3101_s5 = inlined_call_operand.vmem [shape: f32[1,64], index: 5, kind: input, shape index: {}]   ;;  %s3102_s6 = inlined_call_operand.vmem [shape: bf16[64,16], index: 6, kind: input, shape index: {}]   ;;  %s3103_s7 = inlined_call_operand.vmem [shape: f32[1,16], index: 7, kind: input, shape index: {}]   ;;  %s3104_s8 = inlined_call_operand.vmem [shape: f32[2,1,1], index: 8, kind: output, shape index: {}]  }
   0x1   :  { %s2451_s29 = smov 0   ;;  %s2453_s30 = smov 0  }
   0x2   :  { %s2455_s9 = smov 0  }
   0x3 LB: > { %s27_s10 = sadd.s32 1, %s2392_s29  ;;  %s30_s11 = sadd.s32 1, %s2396_s30  ;;  %s2400_s9 = sphi %s2455_s9, %s18_s9   ;;  %s2396_s30 = sphi %s2453_s30, %s3108_s30   ;;  %s2392_s29 = sphi %s2451_s29, %s3107_s29   ;;  %s2388_s28 = sphi %s2449_s28, %s3106_s28   ;;  %s2384_s27 = sphi %s2447_s27, %s3105_s27  }
   0x4   : > { %p28_p0 = scmp.ge.s32.totalorder %s27_s10, 2  ;;  %p1855_p1 = scmp.ge.s32.totalorder %s2400_s9, 1 }
   0x5   : > { %p298_p2 = scmp.lt.s32.totalorder %s2400_s9, 5 }
   0x6   : > { %s3110_s10 = smov (%p28_p0, %s27_s10), 0  ;;  %s3112_s11 = smov (!%p28_p0, %s30_s11), %s2396_s30 }
   0x7   : > { %p299_p3 = pnand %p1855_p1, %p298_p2  ;;  %p32_p4 = scmp.ge.s32.totalorder %s3112_s11, 2 }
   0x8   : > { %s1856_s14 = sshll.u32 (!%p299_p3), %s2384_s27, 3  ;;  %p344_p5 = scmp.lt.s32.totalorder (!%p299_p3), %s2388_s28, 1 }
   0x9   : > { %s3114_s11 = smov (%p32_p4, %s3112_s11), 0  ;;  %302 = sbr.rel (%p299_p3) target bundleno = 1713 (0x6b1), region = 52 }
   0xa   : > { %p346_p6 = scmp.lt.s32.totalorder (!%p299_p3), %s1856_s14, 15  ;;  %s1862_s21 = sshll.u32 (!%p299_p3), %s2384_s27, 6 }
   0xb   : > { %s769_s25 = scalar_lea.vmem (!%p299_p3), [#allocation2], %s1862_s21  ;;  %s1179_s26 = scalar_lea.vmem (!%p299_p3), [#allocation3], %s1862_s21 }
   0xc   : > { %p1925_p7 = scmp.ne.s32.totalorder (!%p299_p3), %s2384_s27, 1 }
   0xe   : > { %v2266_v0 = vld [vmem:[%s3098_s2 + $0x18] sm:$0xff]   ;;  %v2267_v1 = vld [vmem:[%s3098_s2 + $0x10] sm:$0xff]   ;;  %s3116_s28 = smov (!%p344_p5, %s2388_s28), 1  ;;  %v2268_v2 = vld [vmem:[%s3098_s2 + $0x8] sm:$0xff]   ;;  %s3118_s14 = smov (!%p346_p6, %s1856_s14), 15  ;;  %vm435_vm0 = vcmask 523264  }
   0xf   : > { %2040 = vmatprep.subr.bf16.mxu0 %v2266_v0  ;;  %s1857_s19 = sshll.u32 %s3116_s28, 4  ;;  %s365_s22 = scalar_lea.vmem %s3104_s8, %s3116_s28  ;;  %v2274_v3 = vld [vmem:[%s3100_s4 + $0x18] sm:$0xff]   ;;  %v2269_v4 = vld [vmem:[%s3098_s2] sm:$0xff]   ;;  %v2275_v9 = vld [vmem:[%s3100_s4 + $0x10] sm:$0xff]   ;;  %vm770_vm1 = vcmask 130048  }
  0x10   : > { %2041 = vmatpush3.bf16.msra.mxu0 %v2266_v0  ;;  %s349_s12 = sadd.s32 %s1857_s19, %s3118_s14  ;;  %2056 = vmatprep.subr.bf16.mxu1 %v2274_v3  ;;  %v2276_v10 = vld [vmem:[%s3100_s4 + $0x8] sm:$0xff]   ;;  %v2277_v11 = vld [vmem:[%s3100_s4] sm:$0xff]   ;;  %v2278_v12 = vld [vmem:[%s3098_s2 + $0x18] sm:$0xff]  }
  0x11   : > { %2042 = vmatprep.subr.bf16.mxu0 %v2267_v1  ;;  %s1858_s13 = sshll.u32 %s349_s12, 2  ;;  %2057 = vmatpush3.bf16.msra.mxu1 %v2274_v3  ;;  %v2286_v13 = vld [vmem:[%s3102_s6 + $0x18] sm:$0xff]   ;;  %v2532_v16 = vld [vmem:[%s3099_s3] ss:$0 sm:$0xff]  ;;  %v2279_v32 = vld [vmem:[%s3098_s2 + $0x10] sm:$0xff]  }
  0x12   : > { %s351_s17 = scalar_lea.vmem %s3096_s0, %s1858_s13  ;;  %s2509_s14 = scalar_lea.vmem %s3097_s1, %s1858_s13  ;;  %2058 = vmatprep.subr.bf16.mxu1 %v2275_v9  ;;  %v2280_v39 = vld [vmem:[%s3098_s2 + $0x8] sm:$0xff]   ;;  %v2281_v46 = vld [vmem:[%s3098_s2] sm:$0xff]   ;;  %v2287_v50 = vld [vmem:[%s3102_s6 + $0x10] sm:$0xff]  }
  0x13   : > { %v2270_v5 = vld [vmem:[%s351_s17] sm:$0xff]   ;;  %v2271_v6 = vld [vmem:[%s351_s17 + $0x8] sm:$0xff]   ;;  %v2272_v7 = vld [vmem:[%s351_s17 + $0x10] sm:$0xff]  }
  0x14   : > { %2043 = vmatpush3.bf16.msra.mxu0 %v2267_v1  ;;  %2048 = vmatprep.mubr.msk.bf16.mxu0 %vm435_vm0, %v2270_v5  ;;  %v2273_v8 = vld [vmem:[%s351_s17 + $0x18] sm:$0xff]   ;;  %v2282_v44 = vld [vmem:[%s2509_s14] sm:$0xff]   ;;  %v2283_v47 = vld [vmem:[%s2509_s14 + $0x8] sm:$0xff]  }
  0x15   : > { %2044 = vmatprep.subr.bf16.mxu0 %v2268_v2  ;;  %2059 = vmatpush3.bf16.msra.mxu1 %v2275_v9  ;;  %v2284_v48 = vld [vmem:[%s2509_s14 + $0x10] sm:$0xff]   ;;  %v2285_v49 = vld [vmem:[%s2509_s14 + $0x18] sm:$0xff]   ;;  %v2288_v51 = vld [vmem:[%s3102_s6 + $0x8] sm:$0xff]  }
  0x16   : > { %2060 = vmatprep.subr.bf16.mxu1 %v2276_v10  ;;  %v2289_v52 = vld [vmem:[%s3102_s6] sm:$0xff]   ;;  %v2290_v53 = vld [vmem:[%s3100_s4 + $0x18] sm:$0xff]  }
  0x17   : > { %v2578_v56 = vld [vmem:[%s3101_s5] ss:$0 sm:$0xff] }
  0x18   : > { %2045 = vmatpush3.bf16.msra.mxu0 %v2268_v2 }
  0x19   : > { %2046 = vmatprep.subr.bf16.mxu0 %v2269_v4  ;;  %2061 = vmatpush3.bf16.msra.mxu1 %v2276_v10 }
  0x1a   : > { %2062 = vmatprep.subr.bf16.mxu1 %v2277_v11 }
  0x1c   : > { %2047 = vmatpush3.bf16.msra.mxu0 %v2269_v4 }
  0x1d   : > { %2063 = vmatpush3.bf16.msra.mxu1 %v2277_v11  ;;  %2072 = vmatprep.subr.bf16.mxu0 %v2286_v13 }
  0x1e   : > { %2088 = vmatprep.subr.bf16.mxu1 %v2278_v12 }
  0x1f   : > { %2049 = vmatmul.mubr.msk.bf16.vlgmr.msra.gmra.mxu0 %vm435_vm0, %v2271_v6 }
  0x20   : > { %2052 = vmatprep.mubr.msk.bf16.mxu0 %vm435_vm0, %v2272_v7  ;;  %2073 = vmatpush3.bf16.msra.mxu0 %v2286_v13 }
  0x21   : > { %2074 = vmatprep.subr.bf16.mxu0 %v2287_v50 }
  0x24   : > { %2075 = vmatpush3.bf16.msra.mxu0 %v2287_v50 }
  0x25   : > { %2076 = vmatprep.subr.bf16.mxu0 %v2288_v51 }
  0x27   : > { %2053 = vmatmul.mubr.msk.bf16.gmra.mxu0 %vm435_vm0, %v2273_v8  ;;  %v2291_v8 = vld [vmem:[%s3100_s4 + $0x10] sm:$0xff]  }
  0x28   : > { %2077 = vmatpush3.bf16.msra.mxu0 %v2288_v51  ;;  %v2294_v51 = vld [vmem:[%s3102_s6 + $0x18] sm:$0xff]  }
  0x29   : > { %2078 = vmatprep.subr.bf16.mxu0 %v2289_v52 }
  0x2c   : > { %2079 = vmatpush3.bf16.msra.mxu0 %v2289_v52  ;;  %v2296_v52 = vld [vmem:[%s3102_s6 + $0x8] sm:$0xff]  }
  0x2d   : > { %2104 = vmatprep.subr.bf16.mxu0 %v2290_v53 }
  0xdf   : > { %v2050_v14 = vpop.f32.mrf.mxu0 }
  0xe0   : > { %v491_v20 = vadd.f32 %v2050_v14, %v2532_v16 }
  0xe1   : > { %v482_v15 = vpop.f32.mrf.mxu0 }
  0xe2   : > { %v483_v18 = vadd.f32 %v2532_v16, %v482_v15  ;;  %v515_v27 = vmax.f32 %v491_v20, 0.0 }
  0xe3   : > { %v2051_v17 = vpop.f32.mrf.mxu0 }
  0xe4   : > { %v494_v19 = vadd.f32 %v2051_v17, %v2532_v16  ;;  %v513_v25 = vmax.f32 %v483_v18, 0.0  ;;  %v2292_v17 = vld [vmem:[%s3100_s4 + $0x8] sm:$0xff]  }
  0xe5   : > { %v485_v21 = vpop.f32.mrf.mxu0 }
  0xe6   : > { %v486_v22 = vadd.f32 %v2532_v16, %v485_v21  ;;  %v516_v23 = vmax.f32 %v494_v19, 0.0 }
  0xe7   : > { %v2054_v24 = vpop.f32.mrf.mxu0 }
  0xe8   : > { %v514_v26 = vmax.f32 %v486_v22, 0.0  ;;  %v522_v30 = vpack.c.bf16 %v516_v23, %v515_v27  ;;  %v507_v35 = vadd.f32 %v2054_v24, %v2532_v16 }
  0xe9   : > { %v498_v28 = vpop.f32.mrf.mxu0 }
  0xea   : > { %v521_v29 = vpack.c.bf16 %v514_v26, %v513_v25  ;;  %v499_v33 = vadd.f32 %v2532_v16, %v498_v28  ;;  %v519_v42 = vmax.f32 %v507_v35, 0.0  ;;  %v2293_v25 = vld [vmem:[%s3100_s4] sm:$0xff]  }
  0xeb   : > { %v2055_v31 = vpop.f32.mrf.mxu0 }
  0xec   : > { %v510_v34 = vadd.f32 %v2055_v31, %v2532_v16  ;;  %2064 = vmatprep.mubr.msk.bf16.mxu1 %vm435_vm0, %v521_v29  ;;  %v517_v40 = vmax.f32 %v499_v33, 0.0 }
  0xed   : > { %v501_v36 = vpop.f32.mrf.mxu0  ;;  %2065 = vmatmul.mubr.msk.bf16.vlgmr.msra.gmra.mxu1 %vm435_vm0, %v522_v30 }
  0xee   : > { %v502_v37 = vadd.f32 %v2532_v16, %v501_v36  ;;  %2089 = vmatpush3.bf16.msra.mxu1 %v2278_v12  ;;  %v520_v38 = vmax.f32 %v510_v34, 0.0 }
  0xef   : > { %2090 = vmatprep.subr.bf16.mxu1 %v2279_v32 }
  0xf0   : > { %v518_v41 = vmax.f32 %v502_v37, 0.0  ;;  %v524_v45 = vpack.c.bf16 %v520_v38, %v519_v42 }
  0xf2   : > { %v523_v43 = vpack.c.bf16 %v518_v41, %v517_v40  ;;  %2091 = vmatpush3.bf16.msra.mxu1 %v2279_v32 }
  0xf3   : > { %2092 = vmatprep.subr.bf16.mxu1 %v2280_v39 }
  0xf4   : > { %2068 = vmatprep.mubr.msk.bf16.mxu1 %vm435_vm0, %v523_v43 }
  0xf5   : > { %2069 = vmatmul.mubr.msk.bf16.gmra.mxu1 %vm435_vm0, %v524_v45 }
  0xf6   : > { %2093 = vmatpush3.bf16.msra.mxu1 %v2280_v39  ;;  %2096 = vmatprep.mubr.msk.bf16.mxu1 %vm435_vm0, %v2282_v44 }
  0xf7   : > { %2094 = vmatprep.subr.bf16.mxu1 %v2281_v46 }
  0xfa   : > { %2095 = vmatpush3.bf16.msra.mxu1 %v2281_v46 }
  0xfb   : > { %2120 = vmatprep.subr.bf16.mxu1 %v2294_v51 }
  0xfd   : > { %2097 = vmatmul.mubr.msk.bf16.vlgmr.msra.gmra.mxu1 %vm435_vm0, %v2283_v47 }
  0xfe   : > { %2100 = vmatprep.mubr.msk.bf16.mxu1 %vm435_vm0, %v2284_v48  ;;  %2121 = vmatpush3.bf16.msra.mxu1 %v2294_v51 }
 0x105   : > { %2101 = vmatmul.mubr.msk.bf16.gmra.mxu1 %vm435_vm0, %v2285_v49 }
 0x1ad   : > { %v2066_v54 = vpop.f32.mrf.mxu1 }
 0x1ae   : > { %v619_v60 = vadd.f32 %v2066_v54, %v2578_v56  ;;  %v2629_v54 = vld [vmem:[%s3103_s7] ss:$0 sm:$0xff] }
 0x1af   : > { %v610_v55 = vpop.f32.mrf.mxu1 }
 0x1b0   : > { %v611_v58 = vadd.f32 %v2578_v56, %v610_v55  ;;  %v643_v3 = vmax.f32 %v619_v60, 0.0 }
 0x1b1   : > { %v2067_v57 = vpop.f32.mrf.mxu1 }
 0x1b2   : > { %v622_v59 = vadd.f32 %v2067_v57, %v2578_v56  ;;  %v641_v1 = vmax.f32 %v611_v58, 0.0 }
 0x1b3   : > { %v613_v61 = vpop.f32.mrf.mxu1 }
 0x1b4   : > { %v614_v62 = vadd.f32 %v2578_v56, %v613_v61  ;;  %v644_v63 = vmax.f32 %v622_v59, 0.0 }
 0x1b5   : > { %v2070_v0 = vpop.f32.mrf.mxu1 }
 0x1b6   : > { %v642_v2 = vmax.f32 %v614_v62, 0.0  ;;  %v650_v6 = vpack.c.bf16 %v644_v63, %v643_v3  ;;  %v635_v11 = vadd.f32 %v2070_v0, %v2578_v56 }
 0x1b7   : > { %v626_v4 = vpop.f32.mrf.mxu1 }
 0x1b8   : > { %v649_v5 = vpack.c.bf16 %v642_v2, %v641_v1  ;;  %v627_v9 = vadd.f32 %v2578_v56, %v626_v4  ;;  %v647_v20 = vmax.f32 %v635_v11, 0.0 }
 0x1b9   : > { %v2071_v7 = vpop.f32.mrf.mxu1 }
 0x1ba   : > { %v638_v10 = vadd.f32 %v2071_v7, %v2578_v56  ;;  %2080 = vmatprep.mubr.msk.bf16.mxu0 %vm435_vm0, %v649_v5  ;;  %v645_v18 = vmax.f32 %v627_v9, 0.0 }
 0x1bb   : > { %v629_v12 = vpop.f32.mrf.mxu1  ;;  %2081 = vmatmul.mubr.msk.bf16.vlgmr.msra.gmra.mxu0 %vm435_vm0, %v650_v6 }
 0x1bc   : > { %v630_v13 = vadd.f32 %v2578_v56, %v629_v12  ;;  %2105 = vmatpush3.bf16.msra.mxu0 %v2290_v53  ;;  %v648_v14 = vmax.f32 %v638_v10, 0.0  ;;  %v2297_v53 = vld [vmem:[%s3102_s6] sm:$0xff]  }
 0x1bd   : > { %v2098_v15 = vpop.f32.mrf.mxu1  ;;  %2106 = vmatprep.subr.bf16.mxu0 %v2291_v8 }
 0x1be   : > { %v646_v19 = vmax.f32 %v630_v13, 0.0  ;;  %v652_v23 = vpack.c.bf16 %v648_v14, %v647_v20  ;;  %v901_v28 = vadd.f32 %v2098_v15, %v2532_v16 }
 0x1bf   : > { %v892_v21 = vpop.f32.mrf.mxu1 }
 0x1c0   : > { %v651_v22 = vpack.c.bf16 %v646_v19, %v645_v18  ;;  %2107 = vmatpush3.bf16.msra.mxu0 %v2291_v8  ;;  %v893_v26 = vadd.f32 %v2532_v16, %v892_v21  ;;  %v925_v35 = vmax.f32 %v901_v28, 0.0 }
 0x1c1   : > { %v2099_v24 = vpop.f32.mrf.mxu1  ;;  %2108 = vmatprep.subr.bf16.mxu0 %v2292_v17 }
 0x1c2   : > { %v904_v27 = vadd.f32 %v2099_v24, %v2532_v16  ;;  %2084 = vmatprep.mubr.msk.bf16.mxu0 %vm435_vm0, %v651_v22  ;;  %v923_v33 = vmax.f32 %v893_v26, 0.0 }
 0x1c3   : > { %2085 = vmatmul.mubr.msk.bf16.gmra.mxu0 %vm435_vm0, %v652_v23  ;;  %v895_v29 = vpop.f32.mrf.mxu1 }
 0x1c4   : > { %v896_v30 = vadd.f32 %v2532_v16, %v895_v29  ;;  %2109 = vmatpush3.bf16.msra.mxu0 %v2292_v17  ;;  %v926_v31 = vmax.f32 %v904_v27, 0.0 }
 0x1c5   : > { %v2102_v32 = vpop.f32.mrf.mxu1  ;;  %2110 = vmatprep.subr.bf16.mxu0 %v2293_v25 }
 0x1c6   : > { %v924_v34 = vmax.f32 %v896_v30, 0.0  ;;  %v932_v38 = vpack.c.bf16 %v926_v31, %v925_v35  ;;  %v917_v42 = vadd.f32 %v2102_v32, %v2532_v16 }
 0x1c7   : > { %v908_v36 = vpop.f32.mrf.mxu1 }
 0x1c8   : > { %v931_v37 = vpack.c.bf16 %v924_v34, %v923_v33  ;;  %2111 = vmatpush3.bf16.msra.mxu0 %v2293_v25  ;;  %v909_v40 = vadd.f32 %v2532_v16, %v908_v36  ;;  %v929_v48 = vmax.f32 %v917_v42, 0.0 }
 0x1c9   : > { %v2103_v39 = vpop.f32.mrf.mxu1 }
 0x1ca   : > { %v920_v41 = vadd.f32 %v2103_v39, %v2532_v16  ;;  %2112 = vmatprep.mubr.msk.bf16.mxu0 %vm435_vm0, %v931_v37  ;;  %v927_v46 = vmax.f32 %v909_v40, 0.0 }
 0x1cb   : > { %v911_v43 = vpop.f32.mrf.mxu1  ;;  %2113 = vmatmul.mubr.msk.bf16.vlgmr.msra.gmra.mxu0 %vm435_vm0, %v932_v38 }
 0x1cc   : > { %v912_v44 = vadd.f32 %v2532_v16, %v911_v43  ;;  %v930_v45 = vmax.f32 %v920_v41, 0.0  ;;  %v2295_v16 = vld [vmem:[%s3102_s6 + $0x10] sm:$0xff]  }
 0x1cd   : > { %2122 = vmatprep.subr.bf16.mxu1 %v2295_v16 }
 0x1ce   : > { %v928_v47 = vmax.f32 %v912_v44, 0.0  ;;  %v934_v50 = vpack.c.bf16 %v930_v45, %v929_v48  ;;  %2123 = vmatpush3.bf16.msra.mxu1 %v2295_v16 }
 0x1cf   : > { %2124 = vmatprep.subr.bf16.mxu1 %v2296_v52 }
 0x1d0   : > { %v933_v49 = vpack.c.bf16 %v928_v47, %v927_v46 }
 0x1d2   : > { %2116 = vmatprep.mubr.msk.bf16.mxu0 %vm435_vm0, %v933_v49  ;;  %2125 = vmatpush3.bf16.msra.mxu1 %v2296_v52 }
 0x1d3   : > { %2117 = vmatmul.mubr.msk.bf16.gmra.mxu0 %vm435_vm0, %v934_v50  ;;  %2126 = vmatprep.subr.bf16.mxu1 %v2297_v53 }
 0x1d6   : > { %2127 = vmatpush3.bf16.msra.mxu1 %v2297_v53 }
 0x27b   : > { %v2082_v55 = vpop.f32.mrf.mxu0 }
 0x27c   : > { %v747_v57 = vadd.f32 %v2082_v55, %v2629_v54 }
 0x27d   : > { %v738_v58 = vpop.f32.mrf.mxu0 }
 0x27e   : > { %773 = vst.msk [vmem:[%s769_s25 + $0x10] sm:$0xff] %vm770_vm1, %v747_v57  ;;  %v739_v59 = vadd.f32 %v2629_v54, %v738_v58 }
 0x27f   : > { %v2083_v60 = vpop.f32.mrf.mxu0 }
 0x280   : > { %771 = vst.msk [vmem:[%s769_s25] sm:$0xff] %vm770_vm1, %v739_v59  ;;  %v750_v61 = vadd.f32 %v2083_v60, %v2629_v54 }
 0x281   : > { %v741_v62 = vpop.f32.mrf.mxu0 }
 0x282   : > { %774 = vst.msk [vmem:[%s769_s25 + $0x18] sm:$0xff] %vm770_vm1, %v750_v61  ;;  %v742_v63 = vadd.f32 %v2629_v54, %v741_v62 }
 0x283   : > { %v2086_v0 = vpop.f32.mrf.mxu0 }
 0x284   : > { %772 = vst.msk [vmem:[%s769_s25 + $0x8] sm:$0xff] %vm770_vm1, %v742_v63  ;;  %v763_v1 = vadd.f32 %v2086_v0, %v2629_v54 }
 0x285   : > { %v754_v2 = vpop.f32.mrf.mxu0 }
 0x286   : > { %777 = vst.msk [vmem:[%s769_s25 + $0x30] sm:$0xff] %vm770_vm1, %v763_v1  ;;  %v755_v3 = vadd.f32 %v2629_v54, %v754_v2 }
 0x287   : > { %v2087_v4 = vpop.f32.mrf.mxu0 }
 0x288   : > { %775 = vst.msk [vmem:[%s769_s25 + $0x20] sm:$0xff] %vm770_vm1, %v755_v3  ;;  %v766_v5 = vadd.f32 %v2087_v4, %v2629_v54 }
 0x289   : > { %v757_v6 = vpop.f32.mrf.mxu0 }
 0x28a   : > { %778 = vst.msk [vmem:[%s769_s25 + $0x38] sm:$0xff] %vm770_vm1, %v766_v5  ;;  %v758_v7 = vadd.f32 %v2629_v54, %v757_v6 }
 0x28b   : > { %v2114_v8 = vpop.f32.mrf.mxu0 }
 0x28c   : > { %776 = vst.msk [vmem:[%s769_s25 + $0x28] sm:$0xff] %vm770_vm1, %v758_v7  ;;  %v1029_v13 = vadd.f32 %v2114_v8, %v2578_v56 }
 0x28d   : > { %v1020_v9 = vpop.f32.mrf.mxu0 }
 0x28e   : > { %v1021_v11 = vadd.f32 %v2578_v56, %v1020_v9  ;;  %v1053_v21 = vmax.f32 %v1029_v13, 0.0 }
 0x28f   : > { %v2115_v10 = vpop.f32.mrf.mxu0 }
 0x290   : > { %v1032_v12 = vadd.f32 %v2115_v10, %v2578_v56  ;;  %v1051_v19 = vmax.f32 %v1021_v11, 0.0 }
 0x291   : > { %v1023_v14 = vpop.f32.mrf.mxu0 }
 0x292   : > { %v1024_v15 = vadd.f32 %v2578_v56, %v1023_v14  ;;  %v1054_v17 = vmax.f32 %v1032_v12, 0.0 }
 0x293   : > { %v2118_v18 = vpop.f32.mrf.mxu0 }
 0x294   : > { %v1052_v20 = vmax.f32 %v1024_v15, 0.0  ;;  %v1060_v24 = vpack.c.bf16 %v1054_v17, %v1053_v21  ;;  %v1045_v28 = vadd.f32 %v2118_v18, %v2578_v56 }
 0x295   : > { %v1036_v22 = vpop.f32.mrf.mxu0 }
 0x296   : > { %v1059_v23 = vpack.c.bf16 %v1052_v20, %v1051_v19  ;;  %v1037_v26 = vadd.f32 %v2578_v56, %v1036_v22  ;;  %v1057_v34 = vmax.f32 %v1045_v28, 0.0 }
 0x297   : > { %v2119_v25 = vpop.f32.mrf.mxu0 }
 0x298   : > { %v1048_v27 = vadd.f32 %v2119_v25, %v2578_v56  ;;  %2128 = vmatprep.mubr.msk.bf16.mxu1 %vm435_vm0, %v1059_v23  ;;  %v1055_v32 = vmax.f32 %v1037_v26, 0.0 }
 0x299   : > { %v1039_v29 = vpop.f32.mrf.mxu0  ;;  %2129 = vmatmul.mubr.msk.bf16.vlgmr.msra.gmra.mxu1 %vm435_vm0, %v1060_v24 }
 0x29a   : > { %v1040_v30 = vadd.f32 %v2578_v56, %v1039_v29  ;;  %v1058_v31 = vmax.f32 %v1048_v27, 0.0 }
 0x29c   : > { %v1056_v33 = vmax.f32 %v1040_v30, 0.0  ;;  %v1062_v36 = vpack.c.bf16 %v1058_v31, %v1057_v34 }
 0x29e   : > { %v1061_v35 = vpack.c.bf16 %v1056_v33, %v1055_v32 }
 0x2a0   : > { %2132 = vmatprep.mubr.msk.bf16.mxu1 %vm435_vm0, %v1061_v35 }
 0x2a1   : > { %2133 = vmatmul.mubr.msk.bf16.gmra.mxu1 %vm435_vm0, %v1062_v36 }
 0x359   : > { %v2130_v37 = vpop.f32.mrf.mxu1 }
 0x35a   : > { %v1157_v38 = vadd.f32 %v2130_v37, %v2629_v54 }
 0x35b   : > { %v1148_v39 = vpop.f32.mrf.mxu1 }
 0x35c   : > { %1182 = vst.msk [vmem:[%s1179_s26 + $0x10] sm:$0xff] %vm770_vm1, %v1157_v38  ;;  %v1149_v56 = vadd.f32 %v2629_v54, %v1148_v39 }
 0x35d   : > { %v2131_v40 = vpop.f32.mrf.mxu1 }
 0x35e   : > { %1180 = vst.msk [vmem:[%s1179_s26] sm:$0xff] %vm770_vm1, %v1149_v56  ;;  %v1160_v41 = vadd.f32 %v2131_v40, %v2629_v54 }
 0x35f   : > { %v1151_v42 = vpop.f32.mrf.mxu1 }
 0x360   : > { %1183 = vst.msk [vmem:[%s1179_s26 + $0x18] sm:$0xff] %vm770_vm1, %v1160_v41  ;;  %v1152_v43 = vadd.f32 %v2629_v54, %v1151_v42 }
 0x361   : > { %v2134_v44 = vpop.f32.mrf.mxu1 }
 0x362   : > { %1181 = vst.msk [vmem:[%s1179_s26 + $0x8] sm:$0xff] %vm770_vm1, %v1152_v43  ;;  %v1173_v45 = vadd.f32 %v2134_v44, %v2629_v54 }
 0x363   : > { %v1164_v46 = vpop.f32.mrf.mxu1 }
 0x364   : > { %1186 = vst.msk [vmem:[%s1179_s26 + $0x30] sm:$0xff] %vm770_vm1, %v1173_v45  ;;  %v1165_v47 = vadd.f32 %v2629_v54, %v1164_v46 }
 0x365   : > { %v2135_v48 = vpop.f32.mrf.mxu1 }
 0x366   : > { %1184 = vst.msk [vmem:[%s1179_s26 + $0x20] sm:$0xff] %vm770_vm1, %v1165_v47  ;;  %v1176_v49 = vadd.f32 %v2135_v48, %v2629_v54  ;;  %1191 = sbr.rel (%p1925_p7) target bundleno = 1713 (0x6b1), region = 56 }
 0x367   : > { %v1167_v50 = vpop.f32.mrf.mxu1 }
 0x368   : > { %1187 = vst.msk [vmem:[%s1179_s26 + $0x38] sm:$0xff] %vm770_vm1, %v1176_v49  ;;  %v1168_v51 = vadd.f32 %v2629_v54, %v1167_v50 }
 0x36a   : > { %1185 = vst.msk [vmem:[%s1179_s26 + $0x28] sm:$0xff] %vm770_vm1, %v1168_v51 }
 0x36b   : > { %v1192_v54 = vld [vmem:[#allocation2] sm:$0xff]  ;;  %v1193_v8 = vld [vmem:[#allocation2 + $0x8] sm:$0xff]  ;;  %v1194_v10 = vld [vmem:[#allocation2 + $0x10] sm:$0xff]  ;;  %vm1721_vm2 = vcmask 7168   ;;  %vm1763_vm3 = vcmask 0  }
 0x36c   : > { %v2702_v55 = vmul.f32 100.0, %v1192_v54  ;;  %v1200_v58 = vld [vmem:[#allocation2 + $0x40] sm:$0xff]  ;;  %v1201_v9 = vld [vmem:[#allocation2 + $0x48] sm:$0xff]  ;;  %v1202_v11 = vld [vmem:[#allocation2 + $0x50] sm:$0xff]  ;;  %v2844_v12 = vmul.f32 100.0, %v1193_v8  ;;  %v2850_v14 = vmul.f32 100.0, %v1194_v10 }
 0x36d   : > { %v2712_v59 = vmul.f32 100.0, %v1200_v58  ;;  %v2846_v13 = vmul.f32 100.0, %v1201_v9  ;;  %v1195_v15 = vld [vmem:[#allocation2 + $0x18] sm:$0xff]  ;;  %v2854_v17 = vmul.f32 100.0, %v1202_v11  ;;  %v1196_v19 = vld [vmem:[#allocation2 + $0x20] sm:$0xff]  ;;  %v1197_v24 = vld [vmem:[#allocation2 + $0x28] sm:$0xff] }
 0x36e   : > { %2168 = vmatprep.mubr.msk.f32.mxu0 %vm770_vm1, %v2702_v55  ;;  %v1203_v18 = vld [vmem:[#allocation2 + $0x58] sm:$0xff]  ;;  %v1204_v20 = vld [vmem:[#allocation2 + $0x60] sm:$0xff]  ;;  %v2858_v21 = vmul.f32 100.0, %v1195_v15  ;;  %v2866_v23 = vmul.f32 100.0, %v1196_v19  ;;  %v1205_v26 = vld [vmem:[#allocation2 + $0x68] sm:$0xff]  ;;  %v2874_v29 = vmul.f32 100.0, %v1197_v24 }
 0x36f   : > { %2180 = vmatprep.mubr.msk.f32.mxu1 %vm770_vm1, %v2712_v59  ;;  %v2862_v22 = vmul.f32 100.0, %v1203_v18  ;;  %v2870_v25 = vmul.f32 100.0, %v1204_v20  ;;  %v1198_v27 = vld [vmem:[#allocation2 + $0x30] sm:$0xff]  ;;  %v2878_v30 = vmul.f32 100.0, %v1205_v26  ;;  %v1199_v32 = vld [vmem:[#allocation2 + $0x38] sm:$0xff] }
 0x370   : > { %v1206_v28 = vld [vmem:[#allocation2 + $0x70] sm:$0xff]  ;;  %v2882_v31 = vmul.f32 100.0, %v1198_v27  ;;  %v1207_v34 = vld [vmem:[#allocation2 + $0x78] sm:$0xff]  ;;  %v2890_v35 = vmul.f32 100.0, %v1199_v32 }
 0x371   : > { %v2680_v16 = vld [vmem:[#allocation3 + $0x78] sm:$0xff]  ;;  %v2682_v52 = vld [vmem:[#allocation3 + $0x70] sm:$0xff]  ;;  %v2696_v53 = vld [vmem:[#allocation3 + $0x68] sm:$0xff]  ;;  %v2886_v33 = vmul.f32 100.0, %v1206_v28  ;;  %v2894_v36 = vmul.f32 100.0, %v1207_v34 }
 0x372   : > { %2136 = vmatprep.subr.msk.mxu0 %vm770_vm1, %v2680_v16  ;;  %2192 = vmatprep.subr.msk.mxu1 %vm770_vm1, %v2680_v16  ;;  %v2708_v57 = vld [vmem:[#allocation3 + $0x60] sm:$0xff]  ;;  %v2722_v60 = vld [vmem:[#allocation3 + $0x58] sm:$0xff]  ;;  %v2734_v61 = vld [vmem:[#allocation3 + $0x50] sm:$0xff] }
 0x373   : > { %2137 = vmatpush3.xpose.msk.msra.mxu0 %vm770_vm1, %v2680_v16  ;;  %2208 = vmatpush3.xpose.msk.msra.mxu1 %vm770_vm1, %v2680_v16  ;;  %v2744_v62 = vld [vmem:[#allocation3 + $0x48] sm:$0xff]  ;;  %v2754_v63 = vld [vmem:[#allocation3 + $0x40] sm:$0xff]  ;;  %v2764_v0 = vld [vmem:[#allocation3 + $0x38] sm:$0xff] }
 0x374   : > { %2138 = vmatprep.subr.msk.mxu0 %vm770_vm1, %v2682_v52  ;;  %2193 = vmatprep.subr.msk.mxu1 %vm770_vm1, %v2682_v52  ;;  %v2774_v1 = vld [vmem:[#allocation3 + $0x30] sm:$0xff]  ;;  %v2784_v2 = vld [vmem:[#allocation3 + $0x28] sm:$0xff]  ;;  %v2794_v3 = vld [vmem:[#allocation3 + $0x20] sm:$0xff] }
 0x375   : > { %v2804_v4 = vld [vmem:[#allocation3 + $0x18] sm:$0xff]  ;;  %v2814_v5 = vld [vmem:[#allocation3 + $0x10] sm:$0xff]  ;;  %v2824_v6 = vld [vmem:[#allocation3 + $0x8] sm:$0xff] }
 0x376   : > { %v2834_v7 = vld [vmem:[#allocation3] sm:$0xff]  ;;  %v1241_v58 = vmul.f32 %v2824_v6, %v2844_v12  ;;  %v1242_v10 = vmul.f32 %v2814_v5, %v2850_v14 }
 0x377   : > { %2139 = vmatpush3.xpose.msk.msra.mxu0 %vm770_vm1, %v2682_v52  ;;  %2209 = vmatpush3.xpose.msk.msra.mxu1 %vm770_vm1, %v2682_v52  ;;  %v1240_v54 = vmul.f32 %v2834_v7, %v2702_v55 }
 0x378   : > { %2140 = vmatprep.subr.msk.mxu0 %vm770_vm1, %v2696_v53  ;;  %2194 = vmatprep.subr.msk.mxu1 %vm770_vm1, %v2696_v53  ;;  %v1259_v9 = vsel %vm770_vm1, %v1241_v58, 0.0  ;;  %v1262_v55 = vsel %vm770_vm1, %v1242_v10, 0.0 }
 0x379   : > { %v1256_v8 = vsel %vm770_vm1, %v1240_v54, 0.0 }
 0x37b   : > { %2141 = vmatpush3.xpose.msk.msra.mxu0 %vm770_vm1, %v2696_v53  ;;  %2210 = vmatpush3.xpose.msk.msra.mxu1 %vm770_vm1, %v2696_v53 }
 0x37c   : > { %2142 = vmatprep.subr.msk.mxu0 %vm770_vm1, %v2708_v57  ;;  %2195 = vmatprep.subr.msk.mxu1 %vm770_vm1, %v2708_v57 }
 0x37f   : > { %2143 = vmatpush3.xpose.msk.msra.mxu0 %vm770_vm1, %v2708_v57  ;;  %2211 = vmatpush3.xpose.msk.msra.mxu1 %vm770_vm1, %v2708_v57 }
 0x380   : > { %2144 = vmatprep.subr.msk.mxu0 %vm770_vm1, %v2722_v60  ;;  %2196 = vmatprep.subr.msk.mxu1 %vm770_vm1, %v2722_v60 }
 0x383   : > { %2145 = vmatpush3.xpose.msk.msra.mxu0 %vm770_vm1, %v2722_v60  ;;  %2212 = vmatpush3.xpose.msk.msra.mxu1 %vm770_vm1, %v2722_v60 }
 0x384   : > { %2146 = vmatprep.subr.msk.mxu0 %vm770_vm1, %v2734_v61  ;;  %2197 = vmatprep.subr.msk.mxu1 %vm770_vm1, %v2734_v61 }
 0x387   : > { %2147 = vmatpush3.xpose.msk.msra.mxu0 %vm770_vm1, %v2734_v61  ;;  %2213 = vmatpush3.xpose.msk.msra.mxu1 %vm770_vm1, %v2734_v61 }
 0x388   : > { %2148 = vmatprep.subr.msk.mxu0 %vm770_vm1, %v2744_v62  ;;  %2198 = vmatprep.subr.msk.mxu1 %vm770_vm1, %v2744_v62 }
 0x38b   : > { %2149 = vmatpush3.xpose.msk.msra.mxu0 %vm770_vm1, %v2744_v62  ;;  %2214 = vmatpush3.xpose.msk.msra.mxu1 %vm770_vm1, %v2744_v62 }
 0x38c   : > { %2150 = vmatprep.subr.msk.mxu0 %vm770_vm1, %v2754_v63  ;;  %2199 = vmatprep.subr.msk.mxu1 %vm770_vm1, %v2754_v63 }
 0x38f   : > { %2151 = vmatpush3.xpose.msk.msra.mxu0 %vm770_vm1, %v2754_v63  ;;  %2215 = vmatpush3.xpose.msk.msra.mxu1 %vm770_vm1, %v2754_v63 }
 0x390   : > { %2152 = vmatprep.subr.msk.mxu0 %vm770_vm1, %v2764_v0  ;;  %2200 = vmatprep.subr.msk.mxu1 %vm770_vm1, %v2764_v0 }
 0x393   : > { %2153 = vmatpush3.xpose.msk.msra.mxu0 %vm770_vm1, %v2764_v0  ;;  %2216 = vmatpush3.xpose.msk.msra.mxu1 %vm770_vm1, %v2764_v0 }
 0x394   : > { %2154 = vmatprep.subr.msk.mxu0 %vm770_vm1, %v2774_v1  ;;  %2201 = vmatprep.subr.msk.mxu1 %vm770_vm1, %v2774_v1 }
 0x397   : > { %2155 = vmatpush3.xpose.msk.msra.mxu0 %vm770_vm1, %v2774_v1  ;;  %2217 = vmatpush3.xpose.msk.msra.mxu1 %vm770_vm1, %v2774_v1 }
 0x398   : > { %2156 = vmatprep.subr.msk.mxu0 %vm770_vm1, %v2784_v2  ;;  %2202 = vmatprep.subr.msk.mxu1 %vm770_vm1, %v2784_v2 }
 0x39b   : > { %2157 = vmatpush3.xpose.msk.msra.mxu0 %vm770_vm1, %v2784_v2  ;;  %2218 = vmatpush3.xpose.msk.msra.mxu1 %vm770_vm1, %v2784_v2 }
 0x39c   : > { %2158 = vmatprep.subr.msk.mxu0 %vm770_vm1, %v2794_v3  ;;  %2203 = vmatprep.subr.msk.mxu1 %vm770_vm1, %v2794_v3 }
 0x39f   : > { %2159 = vmatpush3.xpose.msk.msra.mxu0 %vm770_vm1, %v2794_v3  ;;  %2219 = vmatpush3.xpose.msk.msra.mxu1 %vm770_vm1, %v2794_v3 }
 0x3a0   : > { %2160 = vmatprep.subr.msk.mxu0 %vm770_vm1, %v2804_v4  ;;  %2204 = vmatprep.subr.msk.mxu1 %vm770_vm1, %v2804_v4 }
 0x3a3   : > { %2161 = vmatpush3.xpose.msk.msra.mxu0 %vm770_vm1, %v2804_v4  ;;  %2220 = vmatpush3.xpose.msk.msra.mxu1 %vm770_vm1, %v2804_v4 }
 0x3a4   : > { %2162 = vmatprep.subr.msk.mxu0 %vm770_vm1, %v2814_v5  ;;  %2205 = vmatprep.subr.msk.mxu1 %vm770_vm1, %v2814_v5 }
 0x3a7   : > { %2163 = vmatpush3.xpose.msk.msra.mxu0 %vm770_vm1, %v2814_v5  ;;  %2221 = vmatpush3.xpose.msk.msra.mxu1 %vm770_vm1, %v2814_v5 }
 0x3a8   : > { %2164 = vmatprep.subr.msk.mxu0 %vm770_vm1, %v2824_v6  ;;  %2206 = vmatprep.subr.msk.mxu1 %vm770_vm1, %v2824_v6 }
 0x3ab   : > { %2165 = vmatpush3.xpose.msk.msra.mxu0 %vm770_vm1, %v2824_v6  ;;  %2222 = vmatpush3.xpose.msk.msra.mxu1 %vm770_vm1, %v2824_v6 }
 0x3ac   : > { %2166 = vmatprep.subr.msk.mxu0 %vm770_vm1, %v2834_v7  ;;  %2207 = vmatprep.subr.msk.mxu1 %vm770_vm1, %v2834_v7 }
 0x3af   : > { %2167 = vmatpush3.xpose.msk.msra.mxu0 %vm770_vm1, %v2834_v7  ;;  %2223 = vmatpush3.xpose.msk.msra.mxu1 %vm770_vm1, %v2834_v7 }
 0x3b2   : > { %2169 = vmatmul.mubr.msk.f32.vlgmr.msra.gmra.mxu0 %vm770_vm1, %v2844_v12  ;;  %2181 = vmatmul.mubr.msk.f32.vlgmr.msra.gmra.mxu1 %vm770_vm1, %v2846_v13 }
 0x3b3   : > { %2171 = vmatprep.mubr.msk.f32.mxu0 %vm770_vm1, %v2850_v14  ;;  %2183 = vmatprep.mubr.msk.f32.mxu1 %vm770_vm1, %v2854_v17 }
 0x3b6   : > { %2172 = vmatmul.mubr.msk.f32.gmra.mxu0 %vm770_vm1, %v2858_v21  ;;  %2184 = vmatmul.mubr.msk.f32.gmra.mxu1 %vm770_vm1, %v2862_v22 }
 0x3b7   : > { %2174 = vmatprep.mubr.msk.f32.mxu0 %vm770_vm1, %v2866_v23  ;;  %2186 = vmatprep.mubr.msk.f32.mxu1 %vm770_vm1, %v2870_v25 }
 0x3ba   : > { %2175 = vmatmul.mubr.msk.f32.gmra.mxu0 %vm770_vm1, %v2874_v29  ;;  %2187 = vmatmul.mubr.msk.f32.gmra.mxu1 %vm770_vm1, %v2878_v30 }
 0x3bb   : > { %2177 = vmatprep.mubr.msk.f32.mxu0 %vm770_vm1, %v2882_v31  ;;  %2189 = vmatprep.mubr.msk.f32.mxu1 %vm770_vm1, %v2886_v33 }
 0x3be   : > { %2178 = vmatmul.mubr.msk.f32.gmra.mxu0 %vm770_vm1, %v2890_v35  ;;  %2190 = vmatmul.mubr.msk.f32.gmra.mxu1 %vm770_vm1, %v2894_v36 }
 0x472   : > { %v2170_v37 = vpop.f32.mrf.mxu0  ;;  %v2904_v39 = vpop.f32.mrf.mxu1 }
 0x474   : > { %v1466_v38 = vpop.f32.mrf.mxu0  ;;  %v1506_v41 = vpop.f32.mrf.mxu1 }
 0x475   : > { %1545 = vmax.xlane.f32.xlu0 %v1466_v38 }
 0x476   : > { %v2906_v56 = vpop.f32.mrf.mxu0  ;;  %v2910_v43 = vpop.f32.mrf.mxu1 }
 0x478   : > { %v1476_v40 = vpop.f32.mrf.mxu0  ;;  %v1516_v46 = vpop.f32.mrf.mxu1 }
 0x479   : > { %1547 = vmax.xlane.f32.xlu0 %v2170_v37  ;;  %1549 = vmax.xlane.f32.xlu1 %v1476_v40 }
 0x47a   : > { %v2908_v42 = vpop.f32.mrf.mxu0  ;;  %v2922_v48 = vpop.f32.mrf.mxu1 }
 0x47c   : > { %v2912_v44 = vpop.f32.mrf.mxu0  ;;  %v2925_v49 = vpop.f32.mrf.mxu1 }
 0x47d   : > { %1551 = vmax.xlane.f32.xlu1 %v2906_v56  ;;  %1553 = vmax.xlane.f32.xlu0 %v2912_v44 }
 0x47e   : > { %v2916_v45 = vpop.f32.mrf.mxu0  ;;  %v2928_v50 = vpop.f32.mrf.mxu1 }
 0x480   : > { %v2918_v47 = vpop.f32.mrf.mxu0  ;;  %v2932_v51 = vpop.f32.mrf.mxu1 }
 0x481   : > { %1555 = vmax.xlane.f32.xlu1 %v2908_v42  ;;  %1557 = vmax.xlane.f32.xlu0 %v2918_v47 }
 0x485   : > { %1559 = vmax.xlane.f32.xlu1 %v2916_v45  ;;  %1561 = vmax.xlane.f32.xlu0 %v1506_v41 }
 0x489   : > { %1563 = vmax.xlane.f32.xlu1 %v2904_v39  ;;  %1565 = vmax.xlane.f32.xlu0 %v1516_v46 }
 0x48d   : > { %1567 = vmax.xlane.f32.xlu1 %v2910_v43  ;;  %1569 = vmax.xlane.f32.xlu0 %v2925_v49 }
 0x491   : > { %1571 = vmax.xlane.f32.xlu1 %v2922_v48  ;;  %1573 = vmax.xlane.f32.xlu0 %v2932_v51 }
 0x495   : > { %1575 = vmax.xlane.f32.xlu1 %v2928_v50  ;;  %1257 = vadd.xlane.f32.xlu0 %v1256_v8 }
 0x499   : > { %1260 = vadd.xlane.f32.xlu1 %v1259_v9 }
 0x49d   : > { %1263 = vadd.xlane.f32.xlu1 %v1262_v55 }
 0x4fe   : > { %v2946_v7 = vpop.xlane.xlu0 %1545 }
 0x4ff   : > { %v1577_v11 = vsub.f32 %v1466_v38, %v2946_v7 }
 0x501   : > { %v1593_v15 = vmul.f32 1.442695, %v1577_v11 }
 0x502   : > { %v2949_v6 = vpop.xlane.xlu0 %1547  ;;  %v2951_v12 = vpop.xlane.xlu1 %1549 }
 0x503   : > { %2298 = vpow2.f32 %v1593_v15  ;;  %v1578_v18 = vsub.f32 %v2170_v37, %v2949_v6  ;;  %v1579_v34 = vsub.f32 %v1476_v40, %v2951_v12 }
 0x505   : > { %v1595_v19 = vmul.f32 1.442695, %v1578_v18  ;;  %v1597_v10 = vmul.f32 1.442695, %v1579_v34 }
 0x506   : > { %v2954_v20 = vpop.xlane.xlu1 %1551  ;;  %v2956_v5 = vpop.xlane.xlu0 %1553 }
 0x507   : > { %2300 = vpow2.f32 %v1595_v19  ;;  %v1580_v58 = vsub.f32 %v2906_v56, %v2954_v20  ;;  %v1581_v15 = vsub.f32 %v2912_v44, %v2956_v5 }
 0x509   : > { %v1599_v40 = vmul.f32 1.442695, %v1580_v58  ;;  %v1601_v19 = vmul.f32 1.442695, %v1581_v15 }
 0x50a   : > { %v2958_v14 = vpop.xlane.xlu1 %1555  ;;  %v2960_v24 = vpop.xlane.xlu0 %1557 }
 0x50b   : > { %v1582_v11 = vsub.f32 %v2908_v42, %v2958_v14 }
 0x50d   : > { %v1603_v18 = vmul.f32 1.442695, %v1582_v11 }
 0x50e   : > { %v2962_v26 = vpop.xlane.xlu1 %1559  ;;  %v2964_v27 = vpop.xlane.xlu0 %1561 }
 0x50f   : > { %v1585_v28 = vsub.f32 %v1506_v41, %v2964_v27 }
 0x510   : > { %v2299_v32 = vpop.eup %2298 }
 0x511   : > { %v1609_v37 = vmul.f32 1.442695, %v1585_v28  ;;  %1625 = vadd.xlane.f32.xlu0 %v2299_v32 }
 0x512   : > { %v2968_v38 = vpop.xlane.xlu1 %1563  ;;  %v2970_v54 = vpop.xlane.xlu0 %1565 }
 0x513   : > { %v1586_v8 = vsub.f32 %v2904_v39, %v2968_v38  ;;  %2302 = vpow2.f32 %v1609_v37  ;;  %v1587_v41 = vsub.f32 %v1516_v46, %v2970_v54  ;;  %v1584_v39 = vsub.f32 %v2916_v45, %v2962_v26 }
 0x514   : > { %v2301_v9 = vpop.eup %2300  ;;  %v1583_v46 = vsub.f32 %v2918_v47, %v2960_v24 }
 0x515   : > { %v1611_v55 = vmul.f32 1.442695, %v1586_v8  ;;  %1627 = vadd.xlane.f32.xlu1 %v2301_v9  ;;  %v1613_v56 = vmul.f32 1.442695, %v1587_v41  ;;  %v1607_v42 = vmul.f32 1.442695, %v1584_v39  ;;  %v1243_v39 = vmul.f32 %v2804_v4, %v2858_v21 }
 0x516   : > { %v2985_v28 = vpop.xlane.xlu1 %1567  ;;  %v1605_v32 = vmul.f32 1.442695, %v1583_v46  ;;  %v2989_v37 = vpop.xlane.xlu0 %1569  ;;  %v1245_v21 = vmul.f32 %v2784_v2, %v2874_v29  ;;  %v1249_v29 = vmul.f32 %v2744_v62, %v2846_v13  ;;  %v1252_v13 = vmul.f32 %v2708_v57, %v2870_v25 }
 0x517   : > { %2304 = vpow2.f32 %v1611_v55  ;;  %v1588_v44 = vsub.f32 %v2910_v43, %v2985_v28  ;;  %v1589_v47 = vsub.f32 %v2925_v49, %v2989_v37 }
 0x518   : > { %2306 = vpow2.f32 %v1597_v10 }
 0x519   : > { %2308 = vpow2.f32 %v1599_v40  ;;  %v1615_v58 = vmul.f32 1.442695, %v1588_v44  ;;  %v1617_v41 = vmul.f32 1.442695, %v1589_v47  ;;  %v1247_v47 = vmul.f32 %v2764_v0, %v2890_v35 }
 0x51a   : > { %2310 = vpow2.f32 %v1613_v56  ;;  %v2993_v9 = vpop.xlane.xlu1 %1571  ;;  %v2997_v40 = vpop.xlane.xlu0 %1573  ;;  %v1250_v35 = vmul.f32 %v2734_v61, %v2854_v17  ;;  %v1292_v61 = vsel %vm770_vm1, %v1252_v13, 0.0  ;;  %v1254_v17 = vmul.f32 %v2682_v52, %v2886_v33 }
 0x51b   : > { %2312 = vpow2.f32 %v1603_v18  ;;  %v1590_v43 = vsub.f32 %v2922_v48, %v2993_v9  ;;  %v1591_v49 = vsub.f32 %v2932_v51, %v2997_v40  ;;  %v1244_v51 = vmul.f32 %v2794_v3, %v2866_v23 }
 0x51c   : > { %2314 = vpow2.f32 %v1601_v19  ;;  %v1277_v2 = vsel %vm770_vm1, %v1247_v47, 0.0 }
 0x51d   : > { %2316 = vpow2.f32 %v1607_v42  ;;  %v1619_v15 = vmul.f32 1.442695, %v1590_v43  ;;  %v1621_v19 = vmul.f32 1.442695, %v1591_v49  ;;  %v1268_v4 = vsel %vm770_vm1, %v1244_v51, 0.0 }
 0x51e   : > { %2318 = vpow2.f32 %v1605_v32  ;;  %v3001_v18 = vpop.xlane.xlu1 %1575  ;;  %v1265_v32 = vsel %vm770_vm1, %v1243_v39, 0.0  ;;  %v1258_v43 = vpop.xlane.xlu0 %1257 }
 0x51f   : > { %2320 = vpow2.f32 %v1615_v58  ;;  %v1592_v46 = vsub.f32 %v2928_v50, %v3001_v18  ;;  %v1246_v58 = vmul.f32 %v2774_v1, %v2882_v31  ;;  %v1283_v31 = vsel %vm770_vm1, %v1249_v29, 0.0 }
 0x520   : > { %v2303_v34 = vpop.eup %2302  ;;  %2322 = vpow2.f32 %v1617_v41  ;;  %v1251_v41 = vmul.f32 %v2722_v60, %v2862_v22  ;;  %v1255_v22 = vmul.f32 %v2680_v16, %v2894_v36 }
 0x521   : > { %1641 = vadd.xlane.f32.xlu0 %v2303_v34  ;;  %2324 = vpow2.f32 %v1619_v15  ;;  %v1623_v44 = vmul.f32 1.442695, %v1592_v46  ;;  %v1274_v23 = vsel %vm770_vm1, %v1246_v58, 0.0 }
 0x522   : > { %2326 = vpow2.f32 %v1621_v19  ;;  %v1289_v62 = vsel %vm770_vm1, %v1251_v41, 0.0  ;;  %v1261_v57 = vpop.xlane.xlu1 %1260 }
 0x523   : > { %2328 = vpow2.f32 %v1623_v44 }
 0x524   : > { %v2305_v45 = vpop.eup %2304 }
 0x525   : > { %v2307_v8 = vpop.eup %2306  ;;  %1643 = vadd.xlane.f32.xlu1 %v2305_v45  ;;  %v1271_v45 = vsel %vm770_vm1, %v1245_v21, 0.0 }
 0x526   : > { %1629 = vadd.xlane.f32.xlu0 %v2307_v8  ;;  %v2309_v10 = vpop.eup %2308  ;;  %v1264_v25 = vpop.xlane.xlu1 %1263 }
 0x527   : > { %v2311_v55 = vpop.eup %2310 }
 0x528   : > { %v2313_v11 = vpop.eup %2312 }
 0x529   : > { %1631 = vadd.xlane.f32.xlu1 %v2309_v10  ;;  %v2315_v56 = vpop.eup %2314  ;;  %v1248_v10 = vmul.f32 %v2754_v63, %v2712_v59  ;;  %v1253_v59 = vmul.f32 %v2696_v53, %v2878_v30  ;;  %v1286_v63 = vsel %vm770_vm1, %v1250_v35, 0.0  ;;  %v1301_v53 = vsel %vm770_vm1, %v1255_v22, 0.0 }
 0x52a   : > { %1645 = vadd.xlane.f32.xlu0 %v2311_v55  ;;  %v2317_v48 = vpop.eup %2316  ;;  %v1298_v30 = vsel %vm770_vm1, %v1254_v17, 0.0 }
 0x52b   : > { %v2319_v42 = vpop.eup %2318  ;;  %v1280_v0 = vsel %vm770_vm1, %v1248_v10, 0.0  ;;  %v1295_v60 = vsel %vm770_vm1, %v1253_v59, 0.0 }
 0x52c   : > { %v2321_v34 = vpop.eup %2320 }
 0x52d   : > { %1635 = vadd.xlane.f32.xlu1 %v2313_v11  ;;  %v2323_v50 = vpop.eup %2322 }
 0x52e   : > { %1633 = vadd.xlane.f32.xlu0 %v2315_v56  ;;  %v2325_v3 = vpop.eup %2324 }
 0x52f   : > { %v2327_v8 = vpop.eup %2326 }
 0x530   : > { %v2329_v1 = vpop.eup %2328 }
 0x531   : > { %1639 = vadd.xlane.f32.xlu1 %v2317_v48 }
 0x532   : > { %1637 = vadd.xlane.f32.xlu0 %v2319_v42 }
 0x535   : > { %1266 = vadd.xlane.f32.xlu1 %v1265_v32 }
 0x536   : > { %1647 = vadd.xlane.f32.xlu0 %v2321_v34 }
 0x539   : > { %1269 = vadd.xlane.f32.xlu1 %v1268_v4 }
 0x53a   : > { %1649 = vadd.xlane.f32.xlu0 %v2323_v50 }
 0x53d   : > { %1272 = vadd.xlane.f32.xlu1 %v1271_v45 }
 0x53e   : > { %1651 = vadd.xlane.f32.xlu0 %v2325_v3 }
 0x541   : > { %1275 = vadd.xlane.f32.xlu1 %v1274_v23 }
 0x542   : > { %1653 = vadd.xlane.f32.xlu0 %v2327_v8 }
 0x545   : > { %1278 = vadd.xlane.f32.xlu1 %v1277_v2 }
 0x546   : > { %1655 = vadd.xlane.f32.xlu0 %v2329_v1 }
 0x549   : > { %1284 = vadd.xlane.f32.xlu1 %v1283_v31 }
 0x54a   : > { %1281 = vadd.xlane.f32.xlu0 %v1280_v0 }
 0x54d   : > { %1290 = vadd.xlane.f32.xlu1 %v1289_v62 }
 0x54e   : > { %1287 = vadd.xlane.f32.xlu0 %v1286_v63 }
 0x551   : > { %1296 = vadd.xlane.f32.xlu1 %v1295_v60 }
 0x552   : > { %1293 = vadd.xlane.f32.xlu0 %v1292_v61 }
 0x555   : > { %1302 = vadd.xlane.f32.xlu1 %v1301_v53 }
 0x556   : > { %1299 = vadd.xlane.f32.xlu0 %v1298_v30 }
 0x59a   : > { %v1626_v11 = vpop.xlane.xlu0 %1625 }
 0x59e   : > { %v1628_v55 = vpop.xlane.xlu1 %1627 }
 0x59f   : > { %2330 = vlog2.f32 %v1628_v55 }
 0x5a0   : > { %2332 = vlog2.f32 %v1626_v11 }
 0x5aa   : > { %v1642_v16 = vpop.xlane.xlu0 %1641 }
 0x5ac   : > { %v2331_v49 = vpop.eup %2330 }
 0x5ad   : > { %v2333_v39 = vpop.eup %2332  ;;  %v1660_v19 = vmul.f32 0.6931472, %v2331_v49 }
 0x5ae   : > { %v1644_v36 = vpop.xlane.xlu1 %1643  ;;  %v1658_v46 = vmul.f32 0.6931472, %v2333_v39 }
 0x5af   : > { %v1630_v15 = vpop.xlane.xlu0 %1629  ;;  %v1690_v51 = vadd.f32 %v1660_v19, %v2949_v6 }
 0x5b0   : > { %2334 = vlog2.f32 %v1630_v15  ;;  %v1689_v34 = vadd.f32 %v1658_v46, %v2946_v7 }
 0x5b1   : > { %v1706_v58 = vsub.f32 %v1690_v51, %v1261_v57 }
 0x5b2   : > { %v1632_v52 = vpop.xlane.xlu1 %1631  ;;  %v1705_v47 = vsub.f32 %v1689_v34, %v1258_v43 }
 0x5b3   : > { %2336 = vlog2.f32 %v1632_v52  ;;  %v1646_v33 = vpop.xlane.xlu0 %1645  ;;  %v1723_v7 = vsel %vm1721_vm2, %v1706_v58, 0.0 }
 0x5b4   : > { %v1722_v35 = vsel %vm1721_vm2, %v1705_v47, 0.0 }
 0x5b5   : > { %v1724_v59 = vadd.f32 %v1723_v7, %v1722_v35 }
 0x5b6   : > { %v1636_v56 = vpop.xlane.xlu1 %1635 }
 0x5b7   : > { %2338 = vlog2.f32 %v1636_v56  ;;  %v1634_v48 = vpop.xlane.xlu0 %1633 }
 0x5b8   : > { %2340 = vlog2.f32 %v1634_v48 }
 0x5ba   : > { %v1640_v42 = vpop.xlane.xlu1 %1639 }
 0x5bb   : > { %2342 = vlog2.f32 %v1640_v42  ;;  %v1638_v32 = vpop.xlane.xlu0 %1637 }
 0x5bc   : > { %2344 = vlog2.f32 %v1638_v32 }
 0x5bd   : > { %v2335_v44 = vpop.eup %2334  ;;  %2346 = vlog2.f32 %v1642_v16 }
 0x5be   : > { %2348 = vlog2.f32 %v1644_v36  ;;  %v1662_v4 = vmul.f32 0.6931472, %v2335_v44  ;;  %v1267_v21 = vpop.xlane.xlu1 %1266 }
 0x5bf   : > { %v1648_v50 = vpop.xlane.xlu0 %1647  ;;  %2350 = vlog2.f32 %v1646_v33 }
 0x5c0   : > { %v2337_v45 = vpop.eup %2336  ;;  %v1691_v3 = vadd.f32 %v1662_v4, %v2951_v12  ;;  %2352 = vlog2.f32 %v1648_v50 }
 0x5c1   : > { %v1664_v23 = vmul.f32 0.6931472, %v2337_v45 }
 0x5c2   : > { %v1707_v8 = vsub.f32 %v1691_v3, %v1264_v25  ;;  %v1270_v2 = vpop.xlane.xlu1 %1269 }
 0x5c3   : > { %v1692_v6 = vadd.f32 %v1664_v23, %v2954_v20  ;;  %v1650_v29 = vpop.xlane.xlu0 %1649 }
 0x5c4   : > { %v2339_v10 = vpop.eup %2338  ;;  %v1725_v12 = vsel %vm1721_vm2, %v1707_v8, 0.0  ;;  %2354 = vlog2.f32 %v1650_v29 }
 0x5c5   : > { %v2341_v1 = vpop.eup %2340  ;;  %v1668_v31 = vmul.f32 0.6931472, %v2339_v10  ;;  %v1708_v41 = vsub.f32 %v1692_v6, %v1267_v21  ;;  %v1726_v53 = vadd.f32 %v1725_v12, %v1724_v59 }
 0x5c6   : > { %v1666_v0 = vmul.f32 0.6931472, %v2341_v1  ;;  %v1273_v62 = vpop.xlane.xlu1 %1272 }
 0x5c7   : > { %v1694_v63 = vadd.f32 %v1668_v31, %v2958_v14  ;;  %v1652_v13 = vpop.xlane.xlu0 %1651  ;;  %v1727_v60 = vsel %vm1721_vm2, %v1708_v41, 0.0 }
 0x5c8   : > { %v2343_v20 = vpop.eup %2342  ;;  %v1693_v22 = vadd.f32 %v1666_v0, %v2956_v5  ;;  %2356 = vlog2.f32 %v1652_v13  ;;  %v1728_v16 = vadd.f32 %v1727_v60, %v1726_v53 }
 0x5c9   : > { %v2345_v61 = vpop.eup %2344  ;;  %v1672_v17 = vmul.f32 0.6931472, %v2343_v20  ;;  %v1710_v43 = vsub.f32 %v1694_v63, %v1273_v62 }
 0x5ca   : > { %v2347_v30 = vpop.eup %2346  ;;  %v1670_v57 = vmul.f32 0.6931472, %v2345_v61  ;;  %v1709_v25 = vsub.f32 %v1693_v22, %v1270_v2  ;;  %v1276_v55 = vpop.xlane.xlu1 %1275 }
 0x5cb   : > { %v2349_v11 = vpop.eup %2348  ;;  %v1654_v36 = vpop.xlane.xlu0 %1653  ;;  %v1696_v5 = vadd.f32 %v1672_v17, %v2962_v26  ;;  %v1674_v49 = vmul.f32 0.6931472, %v2347_v30  ;;  %v1731_v39 = vsel %vm1721_vm2, %v1710_v43, 0.0 }
 0x5cc   : > { %v1729_v14 = vsel %vm1721_vm2, %v1709_v25, 0.0  ;;  %v1695_v15 = vadd.f32 %v1670_v57, %v2960_v24  ;;  %2358 = vlog2.f32 %v1654_v36  ;;  %v2351_v33 = vpop.eup %2350  ;;  %v1676_v56 = vmul.f32 0.6931472, %v2349_v11 }
 0x5cd   : > { %v1730_v52 = vadd.f32 %v1729_v14, %v1728_v16  ;;  %v2353_v46 = vpop.eup %2352  ;;  %v1678_v34 = vmul.f32 0.6931472, %v2351_v33  ;;  %v1697_v45 = vadd.f32 %v1674_v49, %v2964_v27 }
 0x5ce   : > { %v1711_v48 = vsub.f32 %v1695_v15, %v1276_v55  ;;  %v1279_v19 = vpop.xlane.xlu1 %1278  ;;  %v1680_v4 = vmul.f32 0.6931472, %v2353_v46  ;;  %v1698_v26 = vadd.f32 %v1676_v56, %v2968_v38 }
 0x5cf   : > { %v1732_v42 = vadd.f32 %v1731_v39, %v1730_v52  ;;  %v1712_v32 = vsub.f32 %v1696_v5, %v1279_v19  ;;  %v1656_v51 = vpop.xlane.xlu0 %1655  ;;  %v1699_v6 = vadd.f32 %v1678_v34, %v2970_v54 }
 0x5d0   : > { %v1733_v44 = vsel %vm1721_vm2, %v1711_v48, 0.0  ;;  %2360 = vlog2.f32 %v1656_v51  ;;  %v1700_v31 = vadd.f32 %v1680_v4, %v2985_v28 }
 0x5d1   : > { %v1734_v24 = vadd.f32 %v1733_v44, %v1732_v42  ;;  %v1735_v21 = vsel %vm1721_vm2, %v1712_v32, 0.0  ;;  %v2355_v58 = vpop.eup %2354 }
 0x5d2   : > { %v1285_v50 = vpop.xlane.xlu1 %1284  ;;  %v1682_v29 = vmul.f32 0.6931472, %v2355_v58 }
 0x5d3   : > { %v1282_v3 = vpop.xlane.xlu0 %1281  ;;  %v1714_v23 = vsub.f32 %v1698_v26, %v1285_v50  ;;  %v1736_v2 = vadd.f32 %v1735_v21, %v1734_v24 }
 0x5d4   : > { %v1713_v47 = vsub.f32 %v1697_v45, %v1282_v3  ;;  %v1701_v20 = vadd.f32 %v1682_v29, %v2989_v37 }
 0x5d5   : > { %v2357_v8 = vpop.eup %2356  ;;  %v1739_v0 = vsel %vm1721_vm2, %v1714_v23, 0.0 }
 0x5d6   : > { %v1684_v10 = vmul.f32 0.6931472, %v2357_v8  ;;  %v1737_v7 = vsel %vm1721_vm2, %v1713_v47, 0.0  ;;  %v1291_v1 = vpop.xlane.xlu1 %1290 }
 0x5d7   : > { %v1738_v41 = vadd.f32 %v1737_v7, %v1736_v2  ;;  %v1288_v38 = vpop.xlane.xlu0 %1287  ;;  %v1716_v27 = vsub.f32 %v1700_v31, %v1291_v1 }
 0x5d8   : > { %v1715_v35 = vsub.f32 %v1699_v6, %v1288_v38  ;;  %v1702_v54 = vadd.f32 %v1684_v10, %v2993_v9 }
 0x5d9   : > { %v2359_v12 = vpop.eup %2358  ;;  %v1740_v62 = vadd.f32 %v1739_v0, %v1738_v41  ;;  %v1743_v28 = vsel %vm1721_vm2, %v1716_v27, 0.0 }
 0x5da   : > { %v1686_v59 = vmul.f32 0.6931472, %v2359_v12  ;;  %v1741_v63 = vsel %vm1721_vm2, %v1715_v35, 0.0  ;;  %v1297_v13 = vpop.xlane.xlu1 %1296 }
 0x5db   : > { %v1742_v60 = vadd.f32 %v1741_v63, %v1740_v62  ;;  %v1294_v22 = vpop.xlane.xlu0 %1293  ;;  %v1718_v61 = vsub.f32 %v1702_v54, %v1297_v13 }
 0x5dc   : > { %v1717_v17 = vsub.f32 %v1701_v20, %v1294_v22  ;;  %v1703_v43 = vadd.f32 %v1686_v59, %v2997_v40 }
 0x5dd   : > { %v2361_v53 = vpop.eup %2360  ;;  %v1744_v30 = vadd.f32 %v1743_v28, %v1742_v60  ;;  %v1747_v9 = vsel %vm1721_vm2, %v1718_v61, 0.0 }
 0x5de   : > { %v1688_v57 = vmul.f32 0.6931472, %v2361_v53  ;;  %v1745_v25 = vsel %vm1721_vm2, %v1717_v17, 0.0  ;;  %v1303_v16 = vpop.xlane.xlu1 %1302 }
 0x5df   : > { %v1746_v55 = vadd.f32 %v1745_v25, %v1744_v30  ;;  %v1300_v11 = vpop.xlane.xlu0 %1299 }
 0x5e0   : > { %v1719_v36 = vsub.f32 %v1703_v43, %v1300_v11  ;;  %v1704_v37 = vadd.f32 %v1688_v57, %v3001_v18 }
 0x5e1   : > { %v1748_v14 = vadd.f32 %v1747_v9, %v1746_v55 }
 0x5e2   : > { %v1749_v15 = vsel %vm1721_vm2, %v1719_v36, 0.0  ;;  %v1720_v52 = vsub.f32 %v1704_v37, %v1303_v16 }
 0x5e3   : > { %v1750_v5 = vadd.f32 %v1749_v15, %v1748_v14 }
 0x5e4   : > { %v1751_v33 = vsel %vm1721_vm2, %v1720_v52, 0.0 }
 0x5e5   : > { %v1752_v49 = vadd.f32 %v1751_v33, %v1750_v5 }
 0x5e7   : > { %1753 = vadd.xlane.f32.xlu0 %v1752_v49 }
 0x670   : > { %v1754_v56 = vpop.xlane.xlu0 %1753 }
 0x671   : > { %v1755_v40 = vrot.slane %v1754_v56, 4 }
 0x673   : > { %v1756_v39 = vadd.f32 %v1755_v40, %v1754_v56 }
 0x675   : > { %v1757_v48 = vrot.slane %v1756_v39, 2 }
 0x677   : > { %v1758_v19 = vadd.f32 %v1757_v48, %v1756_v39 }
 0x679   : > { %v1759_v46 = vrot.slane %v1758_v19, 1 }
 0x67b   : > { %v1760_v42 = vadd.f32 %v1759_v46, %v1758_v19 }
 0x67d   : > { %2224 = vpush %v1760_v42 }
 0x6ae   : > { %s2225_s27 = spop %2224 }
 0x6af   : > { %v1762_v18 = vstv %s2225_s27 }
 0x6b0   : > { %1764 = vst.msk [vmem:[%s365_s22] sm:$0x1] %vm1763_vm3, %v1762_v18 }
 0x6b1 PF: > { %s18_s9 = sadd.s32 1, %s2400_s9   ;;  %s3105_s27 = smov %s2392_s29 }
 0x6b2   : > { %p15_p8 = scmp.ge.s32.totalorder %s18_s9, 6   ;;  %s3106_s28 = smov %s2396_s30 }
 0x6b3   : > { %s3107_s29 = smov %s3110_s10  ;;  %s3108_s30 = smov %s3114_s11 }
 0x6b4   :  { %17 = sbr.rel (!%p15_p8) target bundleno = 3 (0x3), region = 91 }

</bundles_post_ra>
